<compile_context>
chip_gen: v6e
topology: v6e:2x2x1
jax: 0.10.0
libtpu: 0.0.40
codegen_flags: <defaults>
</compile_context>

<pallas_src>
import functools

import jax
import jax.numpy as jnp
from jax import lax
from jax.experimental import pallas as pl
from jax.experimental.pallas import tpu as pltpu


def _scale_pred_kernel(x_ref, w1_ref, bnb_ref, w2_ref, b2_ref, o_ref, *, H, W):
    # x_ref:  (1, L, Cin)        f32, flattened NHWC activation, flat-padded by (W+1) rows
    # w1_ref: (9, Cin, Cmid_p)   bf16, 3x3 conv weights with BN scale folded in
    # bnb_ref:(1, Cmid_p)        f32, folded BN bias
    # w2_ref: (Cmid_p, Cout_p)   bf16, 1x1 conv weights
    # b2_ref: (1, Cout_p)        f32, 1x1 conv bias
    # o_ref:  (1, HW, Cout_p)    f32
    HW = H * W
    Cmid_p = w1_ref.shape[2]

    # Column index of every output row; masks kill the horizontal wrap-around rows
    # introduced by the flat (row-major) layout for the dx = -1 / +1 taps.
    col = lax.broadcasted_iota(jnp.int32, (HW, 1), 0) % W
    mask_l = (col != 0).astype(jnp.float32)        # keep-mask for dx = -1
    mask_r = (col != (W - 1)).astype(jnp.float32)  # keep-mask for dx = +1

    acc = jnp.zeros((HW, Cmid_p), jnp.float32)
    for t in range(9):                             # unrolled 3x3 taps
        ky, kx = t // 3, t % 3                     # dy = ky-1, dx = kx-1
        off = ky * W + kx                          # static flat offset of this tap
        xs = x_ref[0, pl.ds(off, HW), :]           # (HW, Cin) f32
        if kx == 0:
            xs = xs * mask_l
        elif kx == 2:
            xs = xs * mask_r
        acc = acc + jnp.dot(xs.astype(jnp.bfloat16), w1_ref[t],
                            preferred_element_type=jnp.float32)

    h = jnp.maximum(acc + bnb_ref[...], 0.0)       # folded BN bias + ReLU (f32 VPU)
    out = jnp.dot(h.astype(jnp.bfloat16), w2_ref[...],
                  preferred_element_type=jnp.float32) + b2_ref[...]
    o_ref[0] = out


def scale_prediction(x_nchw, params, num_classes):
    """x_nchw: (N, Cin, H, W) float32. Returns (N, 3, H, W, num_classes+5)."""
    w1_hwio, bn_gamma, bn_beta, bn_mean, bn_var, w2_io, b2 = params
    N, Cin, H, W = x_nchw.shape
    Cmid = 2 * Cin
    Cout = 3 * (num_classes + 5)
    eps = 1e-5
    HW = H * W
    LANE = 128
    Cmid_p = ((Cmid + LANE - 1) // LANE) * LANE     # lane-dense intermediate
    Cout_p = ((Cout + LANE - 1) // LANE) * LANE     # lane-dense output (no vst.msk)

    # --- glue: NCHW -> NHWC, flatten spatial, flat zero pad of (W+1) rows per side.
    # Tap (dy, dx) of the 3x3 conv then becomes the contiguous row window starting at
    # static offset (dy+1)*W + (dx+1); vertical padding is covered by the flat pad and
    # horizontal padding by the in-kernel boundary masks.  No 9x im2col in HBM.
    x = jnp.transpose(x_nchw, (0, 2, 3, 1)).reshape(N, HW, Cin)
    x = jnp.pad(x, ((0, 0), (W + 1, W + 1), (0, 0))).astype(jnp.float32)
    L = HW + 2 * W + 2

    # --- fold BatchNorm (eval) into conv1: scale into the weight columns, keep bias.
    bn_scale = bn_gamma / jnp.sqrt(bn_var + eps)                    # (Cmid,)
    bn_bias = bn_beta - bn_mean * bn_scale                          # (Cmid,)
    w1f = (w1_hwio * bn_scale).reshape(9, Cin, Cmid)                # (tap, Cin, Cmid)
    w1f = jnp.pad(w1f, ((0, 0), (0, 0), (0, Cmid_p - Cmid))).astype(jnp.bfloat16)
    bnb = jnp.pad(bn_bias, (0, Cmid_p - Cmid)).reshape(1, Cmid_p).astype(jnp.float32)
    w2p = jnp.pad(w2_io, ((0, Cmid_p - Cmid), (0, Cout_p - Cout))).astype(jnp.bfloat16)
    b2p = jnp.pad(b2, (0, Cout_p - Cout)).reshape(1, Cout_p).astype(jnp.float32)

    # Each grid step processes one full image (H*W rows of the fused GEMMs).
    # TODO(synk): for very large H*W / Cin, add an inner row-tiling (halo-ed) grid axis
    # so the per-step VMEM footprint stays within the v7x 64 MiB budget.
    grid = (N,)
    flops = 2 * N * HW * (9 * Cin * Cmid_p + Cmid_p * Cout_p)
    bytes_accessed = (x.size * 4 + w1f.size * 2 + bnb.size * 4
                      + w2p.size * 2 + b2p.size * 4 + N * HW * Cout_p * 4)

    out_flat = pl.pallas_call(
        functools.partial(_scale_pred_kernel, H=H, W=W),
        out_shape=jax.ShapeDtypeStruct((N, HW, Cout_p), jnp.float32),
        grid=grid,
        in_specs=[
            pl.BlockSpec((1, L, Cin), lambda n: (n, 0, 0)),
            pl.BlockSpec((9, Cin, Cmid_p), lambda n: (0, 0, 0)),
            pl.BlockSpec((1, Cmid_p), lambda n: (0, 0)),
            pl.BlockSpec((Cmid_p, Cout_p), lambda n: (0, 0)),
            pl.BlockSpec((1, Cout_p), lambda n: (0, 0)),
        ],
        out_specs=pl.BlockSpec((1, HW, Cout_p), lambda n: (n, 0, 0)),
        compiler_params=pltpu.CompilerParams(
            dimension_semantics=("parallel",),
            # Safe on all of v5e/v6e/v7x; raise toward 64-100 MiB on v6e (and keep
            # <= ~48 MiB on v7x) when running realistic YOLO channel counts.
            vmem_limit_bytes=32 * 1024 * 1024,
        ),
        cost_estimate=pl.CostEstimate(
            flops=flops, transcendentals=0, bytes_accessed=bytes_accessed),
    )(x, w1f, bnb, w2p, b2p)

    # --- glue: drop channel padding, match PyTorch view + permute => (N, 3, H, W, nc+5)
    out = out_flat[:, :, :Cout].reshape(N, H, W, 3, num_classes + 5)
    return jnp.transpose(out, (0, 3, 1, 2, 4))


def _reference(x_nchw, params, num_classes):
    """Pure-JAX f32 reference (for correctness check)."""
    w1_hwio, bn_gamma, bn_beta, bn_mean, bn_var, w2_io, b2 = params
    N, Cin, H, W = x_nchw.shape
    eps = 1e-5
    x = jnp.transpose(x_nchw, (0, 2, 3, 1))
    y = lax.conv_general_dilated(
        x, w1_hwio, window_strides=(1, 1), padding="SAME",
        dimension_numbers=("NHWC", "HWIO", "NHWC"),
    )
    y = (y - bn_mean) / jnp.sqrt(bn_var + eps) * bn_gamma + bn_beta
    y = jnp.maximum(y, 0.0)
    y = jnp.einsum("nhwc,cd->nhwd", y, w2_io) + b2
    y = y.reshape(N, H, W, 3, num_classes + 5)
    return jnp.transpose(y, (0, 3, 1, 2, 4))


if __name__ == "__main__":
    # Small shapes consistent with the module.
    N, Cin, H, W = 2, 4, 16, 16
    num_classes = 4
    Cmid = 2 * Cin
    Cout = 3 * (num_classes + 5)

    key = jax.random.PRNGKey(0)
    k_x, k_w1, k_w2, k_b2, k_g, k_b, k_m, k_v = jax.random.split(key, 8)

    x = jax.random.normal(k_x, (N, Cin, H, W), dtype=jnp.float32)

    # Deterministic synthetic parameters (shapes per the module's __init__).
    w1_hwio = 0.1 * jax.random.normal(k_w1, (3, 3, Cin, Cmid), dtype=jnp.float32)
    bn_gamma = 1.0 + 0.05 * jax.random.normal(k_g, (Cmid,), dtype=jnp.float32)
    bn_beta = 0.05 * jax.random.normal(k_b, (Cmid,), dtype=jnp.float32)
    bn_mean = 0.1 * jax.random.normal(k_m, (Cmid,), dtype=jnp.float32)
    bn_var = jnp.abs(1.0 + 0.1 * jax.random.normal(k_v, (Cmid,), dtype=jnp.float32))
    w2_io = 0.1 * jax.random.normal(k_w2, (Cmid, Cout), dtype=jnp.float32)
    b2 = 0.05 * jax.random.normal(k_b2, (Cout,), dtype=jnp.float32)

    params = (w1_hwio, bn_gamma, bn_beta, bn_mean, bn_var, w2_io, b2)

    out = jax.block_until_ready(scale_prediction(x, params, num_classes))
    assert out.shape == (N, 3, H, W, num_classes + 5), out.shape

    ref = jax.block_until_ready(_reference(x, params, num_classes))
    # bf16 MXU operands (f32 accumulation) => loosened tolerance vs the f32 reference.
    assert jnp.allclose(out, ref, atol=2e-2, rtol=2e-2), float(jnp.max(jnp.abs(out - ref)))

    print("KERNEL_OK")
</pallas_src>

<mosaic_0001>
module attributes {stable_mosaic.version = 11 : i64} {
  func.func @_scale_pred_kernel(%arg0: i32, %arg1: memref<1x290x4xf32, #tpu.memory_space<vmem>>, %arg2: memref<9x4x128xbf16, #tpu.memory_space<vmem>>, %arg3: memref<1x128xf32, #tpu.memory_space<vmem>>, %arg4: memref<128x128xbf16, #tpu.memory_space<vmem>>, %arg5: memref<1x128xf32, #tpu.memory_space<vmem>>, %arg6: memref<1x256x128xf32, #tpu.memory_space<vmem>>) attributes {dimension_semantics = [#tpu.dimension_semantics<parallel>], iteration_bounds = array<i64: 2>, scalar_prefetch = 0 : i64, scratch_operands = 0 : i64, tpu.core_type = #tpu.core_type<tc>, window_params = [{transform_indices = @transform_0, window_bounds = array<i64: 1, 290, 4>}, {pipeline_mode = #tpu.pipeline_mode<synchronous>, transform_indices = @transform_1, window_bounds = array<i64: 9, 4, 128>}, {pipeline_mode = #tpu.pipeline_mode<synchronous>, transform_indices = @transform_2, window_bounds = array<i64: 1, 128>}, {pipeline_mode = #tpu.pipeline_mode<synchronous>, transform_indices = @transform_3, window_bounds = array<i64: 128, 128>}, {pipeline_mode = #tpu.pipeline_mode<synchronous>, transform_indices = @transform_4, window_bounds = array<i64: 1, 128>}, {transform_indices = @transform_5, window_bounds = array<i64: 1, 256, 128>}]} {
    %0 = tpu.iota {dimensions = array<i32: 0>} : vector<256x1xi32>
    %c16_i32 = arith.constant 16 : i32
    %c0_i32 = arith.constant 0 : i32
    %1 = arith.cmpi eq, %c16_i32, %c0_i32 : i32
    %c1_i32 = arith.constant 1 : i32
    %2 = arith.select %1, %c1_i32, %c16_i32 : i32
    %3 = vector.broadcast %2 : i32 to vector<256x1xi32>
    %4 = arith.remsi %0, %3 : vector<256x1xi32>
    %c0_i32_0 = arith.constant 0 : i32
    %5 = vector.broadcast %c0_i32_0 : i32 to vector<256x1xi32>
    %6 = arith.cmpi ne, %4, %5 : vector<256x1xi32>
    %c0_i32_1 = arith.constant 0 : i32
    %7 = vector.broadcast %c0_i32_1 : i32 to vector<256x1xi32>
    %8 = arith.cmpi slt, %4, %7 : vector<256x1xi32>
    %c0_i32_2 = arith.constant 0 : i32
    %9 = arith.cmpi slt, %2, %c0_i32_2 : i32
    %10 = vector.broadcast %9 : i1 to vector<256x1xi1>
    %11 = vector.broadcast %10 : vector<256x1xi1> to vector<256x1xi1>
    %12 = arith.xori %8, %11 : vector<256x1xi1>
    %13 = arith.andi %12, %6 : vector<256x1xi1>
    %14 = vector.broadcast %2 : i32 to vector<256x1xi32>
    %15 = arith.addi %4, %14 : vector<256x1xi32>
    %16 = arith.select %13, %15, %4 : vector<256x1xi1>, vector<256x1xi32>
    %c0_i32_3 = arith.constant 0 : i32
    %17 = vector.broadcast %c0_i32_3 : i32 to vector<256x1xi32>
    %18 = arith.cmpi ne, %16, %17 : vector<256x1xi32>
    %19 = arith.extui %18 : vector<256x1xi1> to vector<256x1xi32>
    %20 = arith.sitofp %19 : vector<256x1xi32> to vector<256x1xf32>
    %c15_i32 = arith.constant 15 : i32
    %21 = vector.broadcast %c15_i32 : i32 to vector<256x1xi32>
    %22 = arith.cmpi ne, %16, %21 : vector<256x1xi32>
    %23 = arith.extui %22 : vector<256x1xi1> to vector<256x1xi32>
    %24 = arith.sitofp %23 : vector<256x1xi32> to vector<256x1xf32>
    %cst = arith.constant 0.000000e+00 : f32
    %25 = vector.broadcast %cst : f32 to vector<256x128xf32>
    %c0 = arith.constant 0 : index
    %c0_4 = arith.constant 0 : index
    %c0_5 = arith.constant 0 : index
    %26 = vector.load %arg1[%c0, %c0_4, %c0_5] : memref<1x290x4xf32, #tpu.memory_space<vmem>>, vector<1x256x4xf32>
    %27 = vector.shape_cast %26 : vector<1x256x4xf32> to vector<256x4xf32>
    %28 = vector.broadcast %20 : vector<256x1xf32> to vector<256x4xf32>
    %29 = arith.mulf %27, %28 : vector<256x4xf32>
    %30 = arith.truncf %29 : vector<256x4xf32> to vector<256x4xbf16>
    %c0_6 = arith.constant 0 : index
    %c0_7 = arith.constant 0 : index
    %c0_8 = arith.constant 0 : index
    %31 = vector.load %arg2[%c0_6, %c0_7, %c0_8] : memref<9x4x128xbf16, #tpu.memory_space<vmem>>, vector<1x4x128xbf16>
    %32 = vector.shape_cast %31 : vector<1x4x128xbf16> to vector<4x128xbf16>
    %cst_9 = arith.constant dense<0.000000e+00> : vector<256x128xf32>
    %33 = tpu.matmul %30, %32, %cst_9 {dimension_numbers = #tpu.dot_dimension_numbers<[1], [0], [0], [1], [0, 0, 1, 1], [], []>} : vector<256x4xbf16>, vector<4x128xbf16>, vector<256x128xf32> -> vector<256x128xf32>
    %34 = arith.addf %25, %33 : vector<256x128xf32>
    %c0_10 = arith.constant 0 : index
    %c1 = arith.constant 1 : index
    %c0_11 = arith.constant 0 : index
    %35 = vector.load %arg1[%c0_10, %c1, %c0_11] : memref<1x290x4xf32, #tpu.memory_space<vmem>>, vector<1x256x4xf32>
    %36 = vector.shape_cast %35 : vector<1x256x4xf32> to vector<256x4xf32>
    %37 = arith.truncf %36 : vector<256x4xf32> to vector<256x4xbf16>
    %c1_12 = arith.constant 1 : index
    %c0_13 = arith.constant 0 : index
    %c0_14 = arith.constant 0 : index
    %38 = vector.load %arg2[%c1_12, %c0_13, %c0_14] : memref<9x4x128xbf16, #tpu.memory_space<vmem>>, vector<1x4x128xbf16>
    %39 = vector.shape_cast %38 : vector<1x4x128xbf16> to vector<4x128xbf16>
    %cst_15 = arith.constant dense<0.000000e+00> : vector<256x128xf32>
    %40 = tpu.matmul %37, %39, %cst_15 {dimension_numbers = #tpu.dot_dimension_numbers<[1], [0], [0], [1], [0, 0, 1, 1], [], []>} : vector<256x4xbf16>, vector<4x128xbf16>, vector<256x128xf32> -> vector<256x128xf32>
    %41 = arith.addf %34, %40 : vector<256x128xf32>
    %c0_16 = arith.constant 0 : index
    %c2 = arith.constant 2 : index
    %c0_17 = arith.constant 0 : index
    %42 = vector.load %arg1[%c0_16, %c2, %c0_17] : memref<1x290x4xf32, #tpu.memory_space<vmem>>, vector<1x256x4xf32>
    %43 = vector.shape_cast %42 : vector<1x256x4xf32> to vector<256x4xf32>
    %44 = vector.broadcast %24 : vector<256x1xf32> to vector<256x4xf32>
    %45 = arith.mulf %43, %44 : vector<256x4xf32>
    %46 = arith.truncf %45 : vector<256x4xf32> to vector<256x4xbf16>
    %c2_18 = arith.constant 2 : index
    %c0_19 = arith.constant 0 : index
    %c0_20 = arith.constant 0 : index
    %47 = vector.load %arg2[%c2_18, %c0_19, %c0_20] : memref<9x4x128xbf16, #tpu.memory_space<vmem>>, vector<1x4x128xbf16>
    %48 = vector.shape_cast %47 : vector<1x4x128xbf16> to vector<4x128xbf16>
    %cst_21 = arith.constant dense<0.000000e+00> : vector<256x128xf32>
    %49 = tpu.matmul %46, %48, %cst_21 {dimension_numbers = #tpu.dot_dimension_numbers<[1], [0], [0], [1], [0, 0, 1, 1], [], []>} : vector<256x4xbf16>, vector<4x128xbf16>, vector<256x128xf32> -> vector<256x128xf32>
    %50 = arith.addf %41, %49 : vector<256x128xf32>
    %c0_22 = arith.constant 0 : index
    %c16 = arith.constant 16 : index
    %c0_23 = arith.constant 0 : index
    %51 = vector.load %arg1[%c0_22, %c16, %c0_23] : memref<1x290x4xf32, #tpu.memory_space<vmem>>, vector<1x256x4xf32>
    %52 = vector.shape_cast %51 : vector<1x256x4xf32> to vector<256x4xf32>
    %53 = vector.broadcast %20 : vector<256x1xf32> to vector<256x4xf32>
    %54 = arith.mulf %52, %53 : vector<256x4xf32>
    %55 = arith.truncf %54 : vector<256x4xf32> to vector<256x4xbf16>
    %c3 = arith.constant 3 : index
    %c0_24 = arith.constant 0 : index
    %c0_25 = arith.constant 0 : index
    %56 = vector.load %arg2[%c3, %c0_24, %c0_25] : memref<9x4x128xbf16, #tpu.memory_space<vmem>>, vector<1x4x128xbf16>
    %57 = vector.shape_cast %56 : vector<1x4x128xbf16> to vector<4x128xbf16>
    %cst_26 = arith.constant dense<0.000000e+00> : vector<256x128xf32>
    %58 = tpu.matmul %55, %57, %cst_26 {dimension_numbers = #tpu.dot_dimension_numbers<[1], [0], [0], [1], [0, 0, 1, 1], [], []>} : vector<256x4xbf16>, vector<4x128xbf16>, vector<256x128xf32> -> vector<256x128xf32>
    %59 = arith.addf %50, %58 : vector<256x128xf32>
    %c0_27 = arith.constant 0 : index
    %c17 = arith.constant 17 : index
    %c0_28 = arith.constant 0 : index
    %60 = vector.load %arg1[%c0_27, %c17, %c0_28] : memref<1x290x4xf32, #tpu.memory_space<vmem>>, vector<1x256x4xf32>
    %61 = vector.shape_cast %60 : vector<1x256x4xf32> to vector<256x4xf32>
    %62 = arith.truncf %61 : vector<256x4xf32> to vector<256x4xbf16>
    %c4 = arith.constant 4 : index
    %c0_29 = arith.constant 0 : index
    %c0_30 = arith.constant 0 : index
    %63 = vector.load %arg2[%c4, %c0_29, %c0_30] : memref<9x4x128xbf16, #tpu.memory_space<vmem>>, vector<1x4x128xbf16>
    %64 = vector.shape_cast %63 : vector<1x4x128xbf16> to vector<4x128xbf16>
    %cst_31 = arith.constant dense<0.000000e+00> : vector<256x128xf32>
    %65 = tpu.matmul %62, %64, %cst_31 {dimension_numbers = #tpu.dot_dimension_numbers<[1], [0], [0], [1], [0, 0, 1, 1], [], []>} : vector<256x4xbf16>, vector<4x128xbf16>, vector<256x128xf32> -> vector<256x128xf32>
    %66 = arith.addf %59, %65 : vector<256x128xf32>
    %c0_32 = arith.constant 0 : index
    %c18 = arith.constant 18 : index
    %c0_33 = arith.constant 0 : index
    %67 = vector.load %arg1[%c0_32, %c18, %c0_33] : memref<1x290x4xf32, #tpu.memory_space<vmem>>, vector<1x256x4xf32>
    %68 = vector.shape_cast %67 : vector<1x256x4xf32> to vector<256x4xf32>
    %69 = vector.broadcast %24 : vector<256x1xf32> to vector<256x4xf32>
    %70 = arith.mulf %68, %69 : vector<256x4xf32>
    %71 = arith.truncf %70 : vector<256x4xf32> to vector<256x4xbf16>
    %c5 = arith.constant 5 : index
    %c0_34 = arith.constant 0 : index
    %c0_35 = arith.constant 0 : index
    %72 = vector.load %arg2[%c5, %c0_34, %c0_35] : memref<9x4x128xbf16, #tpu.memory_space<vmem>>, vector<1x4x128xbf16>
    %73 = vector.shape_cast %72 : vector<1x4x128xbf16> to vector<4x128xbf16>
    %cst_36 = arith.constant dense<0.000000e+00> : vector<256x128xf32>
    %74 = tpu.matmul %71, %73, %cst_36 {dimension_numbers = #tpu.dot_dimension_numbers<[1], [0], [0], [1], [0, 0, 1, 1], [], []>} : vector<256x4xbf16>, vector<4x128xbf16>, vector<256x128xf32> -> vector<256x128xf32>
    %75 = arith.addf %66, %74 : vector<256x128xf32>
    %c0_37 = arith.constant 0 : index
    %c32 = arith.constant 32 : index
    %c0_38 = arith.constant 0 : index
    %76 = vector.load %arg1[%c0_37, %c32, %c0_38] : memref<1x290x4xf32, #tpu.memory_space<vmem>>, vector<1x256x4xf32>
    %77 = vector.shape_cast %76 : vector<1x256x4xf32> to vector<256x4xf32>
    %78 = vector.broadcast %20 : vector<256x1xf32> to vector<256x4xf32>
    %79 = arith.mulf %77, %78 : vector<256x4xf32>
    %80 = arith.truncf %79 : vector<256x4xf32> to vector<256x4xbf16>
    %c6 = arith.constant 6 : index
    %c0_39 = arith.constant 0 : index
    %c0_40 = arith.constant 0 : index
    %81 = vector.load %arg2[%c6, %c0_39, %c0_40] : memref<9x4x128xbf16, #tpu.memory_space<vmem>>, vector<1x4x128xbf16>
    %82 = vector.shape_cast %81 : vector<1x4x128xbf16> to vector<4x128xbf16>
    %cst_41 = arith.constant dense<0.000000e+00> : vector<256x128xf32>
    %83 = tpu.matmul %80, %82, %cst_41 {dimension_numbers = #tpu.dot_dimension_numbers<[1], [0], [0], [1], [0, 0, 1, 1], [], []>} : vector<256x4xbf16>, vector<4x128xbf16>, vector<256x128xf32> -> vector<256x128xf32>
    %84 = arith.addf %75, %83 : vector<256x128xf32>
    %c0_42 = arith.constant 0 : index
    %c33 = arith.constant 33 : index
    %c0_43 = arith.constant 0 : index
    %85 = vector.load %arg1[%c0_42, %c33, %c0_43] : memref<1x290x4xf32, #tpu.memory_space<vmem>>, vector<1x256x4xf32>
    %86 = vector.shape_cast %85 : vector<1x256x4xf32> to vector<256x4xf32>
    %87 = arith.truncf %86 : vector<256x4xf32> to vector<256x4xbf16>
    %c7 = arith.constant 7 : index
    %c0_44 = arith.constant 0 : index
    %c0_45 = arith.constant 0 : index
    %88 = vector.load %arg2[%c7, %c0_44, %c0_45] : memref<9x4x128xbf16, #tpu.memory_space<vmem>>, vector<1x4x128xbf16>
    %89 = vector.shape_cast %88 : vector<1x4x128xbf16> to vector<4x128xbf16>
    %cst_46 = arith.constant dense<0.000000e+00> : vector<256x128xf32>
    %90 = tpu.matmul %87, %89, %cst_46 {dimension_numbers = #tpu.dot_dimension_numbers<[1], [0], [0], [1], [0, 0, 1, 1], [], []>} : vector<256x4xbf16>, vector<4x128xbf16>, vector<256x128xf32> -> vector<256x128xf32>
    %91 = arith.addf %84, %90 : vector<256x128xf32>
    %c0_47 = arith.constant 0 : index
    %c34 = arith.constant 34 : index
    %c0_48 = arith.constant 0 : index
    %92 = vector.load %arg1[%c0_47, %c34, %c0_48] : memref<1x290x4xf32, #tpu.memory_space<vmem>>, vector<1x256x4xf32>
    %93 = vector.shape_cast %92 : vector<1x256x4xf32> to vector<256x4xf32>
    %94 = vector.broadcast %24 : vector<256x1xf32> to vector<256x4xf32>
    %95 = arith.mulf %93, %94 : vector<256x4xf32>
    %96 = arith.truncf %95 : vector<256x4xf32> to vector<256x4xbf16>
    %c8 = arith.constant 8 : index
    %c0_49 = arith.constant 0 : index
    %c0_50 = arith.constant 0 : index
    %97 = vector.load %arg2[%c8, %c0_49, %c0_50] : memref<9x4x128xbf16, #tpu.memory_space<vmem>>, vector<1x4x128xbf16>
    %98 = vector.shape_cast %97 : vector<1x4x128xbf16> to vector<4x128xbf16>
    %cst_51 = arith.constant dense<0.000000e+00> : vector<256x128xf32>
    %99 = tpu.matmul %96, %98, %cst_51 {dimension_numbers = #tpu.dot_dimension_numbers<[1], [0], [0], [1], [0, 0, 1, 1], [], []>} : vector<256x4xbf16>, vector<4x128xbf16>, vector<256x128xf32> -> vector<256x128xf32>
    %100 = arith.addf %91, %99 : vector<256x128xf32>
    %c0_52 = arith.constant 0 : index
    %c0_53 = arith.constant 0 : index
    %101 = vector.load %arg3[%c0_52, %c0_53] : memref<1x128xf32, #tpu.memory_space<vmem>>, vector<1x128xf32>
    %102 = vector.broadcast %101 : vector<1x128xf32> to vector<256x128xf32>
    %103 = arith.addf %100, %102 : vector<256x128xf32>
    %cst_54 = arith.constant 0.000000e+00 : f32
    %104 = vector.broadcast %cst_54 : f32 to vector<256x128xf32>
    %105 = arith.maximumf %103, %104 : vector<256x128xf32>
    %106 = arith.truncf %105 : vector<256x128xf32> to vector<256x128xbf16>
    %c0_55 = arith.constant 0 : index
    %c0_56 = arith.constant 0 : index
    %107 = vector.load %arg4[%c0_55, %c0_56] : memref<128x128xbf16, #tpu.memory_space<vmem>>, vector<128x128xbf16>
    %cst_57 = arith.constant dense<0.000000e+00> : vector<256x128xf32>
    %108 = tpu.matmul %106, %107, %cst_57 {dimension_numbers = #tpu.dot_dimension_numbers<[1], [0], [0], [1], [0, 0, 1, 1], [], []>} : vector<256x128xbf16>, vector<128x128xbf16>, vector<256x128xf32> -> vector<256x128xf32>
    %c0_58 = arith.constant 0 : index
    %c0_59 = arith.constant 0 : index
    %109 = vector.load %arg5[%c0_58, %c0_59] : memref<1x128xf32, #tpu.memory_space<vmem>>, vector<1x128xf32>
    %110 = vector.broadcast %109 : vector<1x128xf32> to vector<256x128xf32>
    %111 = arith.addf %108, %110 : vector<256x128xf32>
    %c0_60 = arith.constant 0 : index
    %c0_61 = arith.constant 0 : index
    %c0_62 = arith.constant 0 : index
    %112 = vector.load %arg6[%c0_60, %c0_61, %c0_62] : memref<1x256x128xf32, #tpu.memory_space<vmem>>, vector<1x256x128xf32>
    %113 = vector.shape_cast %112 : vector<1x256x128xf32> to vector<256x128xf32>
    %114 = vector.shape_cast %111 : vector<256x128xf32> to vector<1x256x128xf32>
    tpu.vector_store %arg6[%c0_60, %c0_61, %c0_62], %114 {strides = array<i32>} : memref<1x256x128xf32, #tpu.memory_space<vmem>>, vector<1x256x128xf32>,
    return
  }
  func.func @transform_0(%arg0: i32) -> (i32, i32, i32) {
    %c0_i32 = arith.constant 0 : i32
    %c0_i32_0 = arith.constant 0 : i32
    %c0_i32_1 = arith.constant 0 : i32
    return %arg0, %c0_i32, %c0_i32_0 : i32, i32, i32
  }
  func.func @transform_1(%arg0: i32) -> (i32, i32, i32) {
    %c0_i32 = arith.constant 0 : i32
    %c0_i32_0 = arith.constant 0 : i32
    %c0_i32_1 = arith.constant 0 : i32
    %c0_i32_2 = arith.constant 0 : i32
    return %c0_i32, %c0_i32_0, %c0_i32_1 : i32, i32, i32
  }
  func.func @transform_2(%arg0: i32) -> (i32, i32) {
    %c0_i32 = arith.constant 0 : i32
    %c0_i32_0 = arith.constant 0 : i32
    %c0_i32_1 = arith.constant 0 : i32
    return %c0_i32, %c0_i32_0 : i32, i32
  }
  func.func @transform_3(%arg0: i32) -> (i32, i32) {
    %c0_i32 = arith.constant 0 : i32
    %c0_i32_0 = arith.constant 0 : i32
    %c0_i32_1 = arith.constant 0 : i32
    return %c0_i32, %c0_i32_0 : i32, i32
  }
  func.func @transform_4(%arg0: i32) -> (i32, i32) {
    %c0_i32 = arith.constant 0 : i32
    %c0_i32_0 = arith.constant 0 : i32
    %c0_i32_1 = arith.constant 0 : i32
    return %c0_i32, %c0_i32_0 : i32, i32
  }
  func.func @transform_5(%arg0: i32) -> (i32, i32, i32) {
    %c0_i32 = arith.constant 0 : i32
    %c0_i32_0 = arith.constant 0 : i32
    %c0_i32_1 = arith.constant 0 : i32
    return %arg0, %c0_i32, %c0_i32_0 : i32, i32, i32
  }
}

</mosaic_0001>

<bundles_post_ra>
// kernel: tpu_custom_call.1
= control target key start
LH: loop header
LB: loop body
LE: loop exit
PB: predicated region body
PF: predicated region fallthrough
CT: control target
= control target key end

     0   :  { %10 = vsyncpa [#allocation3], 0  ;;  %s6709_s0 = inlined_call_operand.vmem [shape: f32[2,290,4], index: 0, kind: input, shape index: {}]   ;;  %s6710_s1 = inlined_call_operand.vmem [shape: bf16[9,4,128], index: 1, kind: input, shape index: {}]   ;;  %s6711_s2 = inlined_call_operand.vmem [shape: f32[1,128], index: 2, kind: input, shape index: {}]   ;;  %s6712_s3 = inlined_call_operand.vmem [shape: bf16[128,128], index: 3, kind: input, shape index: {}]   ;;  %s6713_s4 = inlined_call_operand.vmem [shape: f32[1,128], index: 4, kind: input, shape index: {}]   ;;  %s6714_s5 = inlined_call_operand.hbm [shape: f32[2,256,128], index: 5, kind: output, shape index: {}]  }
   0x1   :  { %12 = vsyncpa [#allocation3 + $0x1], 0  ;;  %s4928_s18 = smov 0   ;;  %s4930_s19 = smov 0  }
   0x2   :  { %s4932_s20 = smov 0   ;;  %s4934_s21 = smov 0  }
   0x3 LB: > { %s4949_s22 = sadd.s32 4294967295, %s4892_s21   ;;  %s4035_s23 = sadd.s32 4294967294, %s4892_s21   ;;  %s4892_s21 = sphi %s4934_s21, %s6942_s21   ;;  %s4888_s20 = sphi %s4932_s20, %s6941_s20   ;;  %s4884_s19 = sphi %s4930_s19, %s6940_s19   ;;  %s4880_s18 = sphi %s4928_s18, %s6939_s18  }
   0x4   : > { %s4953_s24 = sadd.s32 1, %s4892_s21   ;;  %s135_s25 = sadd.s32 1, %s4888_s20 }
   0x5   : > { %s132_s26 = ssub.s32 %s4892_s21, %s4953_s24  ;;  %p145_p0 = scmp.ne.s32.totalorder %s4888_s20, %s4884_s19 }
   0x6   : > { %p133_p1 = scmp.eq.s32.totalorder %s132_s26, 0  ;;  %p146_p2 = scmp.eq.s32.totalorder %s4949_s22, 1 }
   0x7   : > { %p151_p3 = scmp.ne.s32.totalorder %s4884_s19, %s4880_s18  ;;  %p152_p4 = scmp.eq.s32.totalorder %s4035_s23, 1 }
   0x8   : > { %s4964_s27 = scalar_select %p133_p1, %s4888_s20, %s135_s25  }
   0x9   : > { %p4966_p5 = por %p146_p2, %p145_p0  ;;  %p4970_p6 = por %p152_p4, %p151_p3 }
   0xa   : > { %p4038_p7 = scmp.ge.s32.totalorder %s4892_s21, 1  ;;  %p190_p8 = scmp.lt.s32.totalorder %s4892_s21, 3 }
   0xc   : > { %p191_p9 = pnand %p4038_p7, %p190_p8 }
   0xe   : > { %194 = sbr.rel (%p191_p9) target bundleno = 765 (0x2fd), region = 40 }
  0x13   : > { %v4073_v0 = vld [vmem:[%s6710_s1 + $0x2] sm:$0x3]  ;;  %vm1013_vm0 = vcmask 1041408   ;;  %p218_p10 = scmp.lt.s32.totalorder %s4949_s22, 1  ;;  %v224_v1 = vlaneseq  ;;  %v913_v3 = vld [vmem:[%s6710_s1] sm:$0x3] }
  0x14   : > { %4772 = vmatprep.subr.msk.bf16.mxu0 %vm1013_vm0, %v4073_v0  ;;  %v1015_v2 = vsel %vm1013_vm0, %v4073_v0, 0  ;;  %v4106_v4 = vld [vmem:[%s6710_s1 + $0x4] sm:$0x3]  ;;  %4773 = vmatprep.subr.msk.bf16.mxu1 %vm1013_vm0, %v913_v3  ;;  %v1227_v5 = vsel %vm1013_vm0, %v913_v3, 0  ;;  %v4123_v7 = vld [vmem:[%s6710_s1 + $0x6] sm:$0x3] }
  0x15   : > { %4419 = vmatpush3.bf16.msra.mxu0 %v1015_v2  ;;  %s219_s11 = scalar_select %p218_p10, %s4949_s22, 1  ;;  %v4991_v6 = vshrl.u32 %v224_v1, 7  ;;  %4453 = vmatpush3.bf16.msra.mxu1 %v1227_v5  ;;  %vm964_vm1 = vcmask 31744   ;;  %v1521_v19 = vsel %vm1013_vm0, %v4106_v4, 0  ;;  %v6716_v20 = vmov 0.0  }
  0x16   : > { %4774 = vmatprep.subr.msk.bf16.mxu0 %vm1013_vm0, %v4106_v4  ;;  %4775 = vmatprep.subr.msk.bf16.mxu1 %vm1013_vm0, %v4123_v7  ;;  %v5073_v47 = vld [vmem:[%s6710_s1 + $0x8] sm:$0x3]  ;;  %v5078_v48 = vld [vmem:[%s6710_s1 + $0xa] sm:$0x3]  ;;  %v1847_v55 = vsel %vm1013_vm0, %v4123_v7, 0  ;;  %s4240_s26 = sshll.u32 %s4949_s22, 12 }
  0x17   : > { %s4781_s14 = smul.u32 296, %s219_s11  ;;  %v261_v8 = vand.u32 15, %v4991_v6  ;;  %v227_v9 = vadd.s32 16, %v4991_v6  ;;  %v229_v10 = vadd.s32 32, %v4991_v6  ;;  %v231_v11 = vadd.s32 48, %v4991_v6  ;;  %s6660_s7 = scalar_lea.hbm %s6714_s5, %s4240_s26 }
  0x18   : > { %v233_v12 = vadd.s32 64, %v4991_v6  ;;  %v235_v22 = vadd.s32 80, %v4991_v6  ;;  %v237_v40 = vadd.s32 96, %v4991_v6  ;;  %v239_v4 = vadd.s32 112, %v4991_v6  ;;  %s4895_s9 = smov [#allocation2]  }
  0x19   : > { %s5006_s17 = scalar_lea.vmem %s6709_s0, %s4781_s14  ;;  %vm641_vm2 = vcmp.ne.s32.totalorder %v261_v8, 0  ;;  %v275_v13 = vand.u32 15, %v227_v9  ;;  %v289_v14 = vand.u32 15, %v229_v10  ;;  %v303_v15 = vand.u32 15, %v231_v11  ;;  %s215_s14 = sand.u32 1, %s4884_s19  }
  0x1a   : > { %v914_v16 = vld [vmem:[%s5006_s17 + $0x1] sm:$0xff]  ;;  %v915_v17 = vld [vmem:[%s5006_s17 + $0x9] sm:$0xff]  ;;  %v916_v18 = vld [vmem:[%s5006_s17 + $0x11] sm:$0xff]  ;;  %v5013_v21 = vsel %vm641_vm2, 1.0, %v6716_v20  ;;  %v317_v39 = vand.u32 15, %v233_v12  ;;  %v331_v54 = vand.u32 15, %v235_v22 }
  0x1b   : > { %v946_v23 = vpack.c.bf16 %v915_v17, %v914_v16  ;;  %v917_v24 = vld [vmem:[%s5006_s17 + $0x19] sm:$0xff]  ;;  %v834_v26 = vld [vmem:[%s5006_s17 + $0x8] sm:$0xff]  ;;  %vm643_vm3 = vcmp.ne.s32.totalorder %v275_v13, 0  ;;  %vm645_vm4 = vcmp.ne.s32.totalorder %v289_v14, 0  ;;  %vm5019_vm5 = vcmp.ne.s32.totalorder %v303_v15, 0  ;;  %v5027_v30 = vld [vmem:[%s5006_s17 + $0x10] sm:$0xff] }
  0x1c   : > { %v833_v25 = vld [vmem:[%s5006_s17] sm:$0xff]  ;;  %v5023_v28 = vpack.c.bf16 %v917_v24, %v916_v18  ;;  %v5033_v32 = vsel %vm643_vm3, 1.0, %v6716_v20  ;;  %v5036_v33 = vld [vmem:[%s5006_s17 + $0x18] sm:$0xff]  ;;  %v5039_v34 = vsel %vm645_vm4, 1.0, %v6716_v20  ;;  %v5049_v37 = vld [vmem:[%s5006_s17 + $0x28] sm:$0xff]  ;;  %v5068_v46 = vsel %vm5019_vm5, 1.0, %v6716_v20 }
  0x1d   : > { %v865_v29 = vmul.f32 %v5013_v21, %v833_v25  ;;  %v5030_v31 = vld [vmem:[%s5006_s17 + $0x20] sm:$0xff]  ;;  %6777 = vst [vmem:[#allocation6_spill] sm:$0xff] %v5039_v34  ;;  %4420 = vmatprep.mubr.msk.bf16.mxu0 %vm964_vm1, %v946_v23  ;;  %v867_v36 = vmul.f32 %v5033_v32, %v5027_v30  ;;  %v5052_v38 = vld [vmem:[%s5006_s17 + $0x30] sm:$0xff]  ;;  %v5082_v50 = vld [vmem:[%s5006_s17 + $0x38] sm:$0xff]  ;;  %vm649_vm6 = vcmp.ne.s32.totalorder %v317_v39, 0  ;;  %v345_v0 = vand.u32 15, %v237_v40 }
  0x1e   : > { %6776 = vst [vmem:[#allocation5_spill] sm:$0xff] %v5023_v28  ;;  %v5044_v35 = vmul.f32 %v5013_v21, %v5030_v31  ;;  %4421 = vmatmul.mubr.msk.bf16.vlgmr.msra.gmra.mxu0 %vm964_vm1, %v5023_v28  ;;  %v5059_v42 = vmul.f32 %v5033_v32, %v5052_v38  ;;  %v918_v43 = vld [vmem:[%s5006_s17 + $0x21] sm:$0xff]  ;;  %v919_v44 = vld [vmem:[%s5006_s17 + $0x29] sm:$0xff]  ;;  %v869_v45 = vmul.f32 %v5039_v34, %v5030_v31  ;;  %v920_v52 = vld [vmem:[%s5006_s17 + $0x31] sm:$0xff]  ;;  %v5107_v63 = vsel %vm649_vm6, 1.0, %v6716_v20  ;;  %s4039_s15 = sshll.u32 %s215_s14, 8 }
  0x1f   : > { %v897_v41 = vpack.c.bf16 %v834_v26, %v865_v29  ;;  %4487 = vmatpush3.bf16.msra.mxu0 %v1521_v19  ;;  %v898_v49 = vpack.c.bf16 %v5036_v33, %v867_v36  ;;  %v5084_v51 = vpack.c.bf16 %v919_v44, %v918_v43  ;;  %v921_v53 = vld [vmem:[%s5006_s17 + $0x39] sm:$0xff]  ;;  %v922_v58 = vld [vmem:[%s5006_s17 + $0x41] sm:$0xff]  ;;  %v923_v59 = vld [vmem:[%s5006_s17 + $0x49] sm:$0xff]  ;;  %v871_v61 = vmul.f32 %v5068_v46, %v5052_v38  ;;  %s6593_s25 = scalar_lea.vmem [#allocation2], %s4039_s15  ;;  %s6669_s22 = scalar_lea.sflag [#allocation3], %s215_s14 }
  0x20   : > { %6778 = vst [vmem:[#allocation7_spill] sm:$0xff] %v5044_v35  ;;  %6779 = vst [vmem:[#allocation8_spill] sm:$0xff] %v5059_v42  ;;  %v899_v57 = vpack.c.bf16 %v5049_v37, %v869_v45  ;;  %v5096_v60 = vld [vmem:[%s5006_s17 + $0x40] sm:$0xff]  ;;  %v5103_v62 = vpack.c.bf16 %v921_v53, %v920_v52  ;;  %v5109_v1 = vpack.c.bf16 %v923_v59, %v922_v58  ;;  %v5112_v2 = vld [vmem:[%s5006_s17 + $0x48] sm:$0xff]  ;;  %vm651_vm7 = vcmp.ne.s32.totalorder %v331_v54, 0  ;;  %s3973_s30 = sshll.u32 %s6593_s25, 4  ;;  %s6662_s30 = int_to_ptr.vmem [resolvable:$true] %s3973_s30 }
  0x21   : > { %6780 = vst [vmem:[#allocation9_spill] sm:$0xff] %v5084_v51  ;;  %4454 = vmatprep.mubr.msk.bf16.mxu1 %vm964_vm1, %v897_v41  ;;  %4424 = vmatprep.mubr.msk.bf16.mxu0 %vm964_vm1, %v5084_v51  ;;  %v873_v3 = vmul.f32 %v5107_v63, %v5096_v60  ;;  %vm653_vm8 = vcmp.ne.s32.totalorder %v345_v0, 0  ;;  %v241_v5 = vadd.s32 128, %v4991_v6  ;;  %v900_v7 = vpack.c.bf16 %v5082_v50, %v871_v61  ;;  %v5130_v10 = vld [vmem:[%s5006_s17 + $0x50] sm:$0xff]  ;;  %v925_v12 = vld [vmem:[%s5006_s17 + $0x59] sm:$0xff]  ;;  %v926_v16 = vld [vmem:[%s5006_s17 + $0x61] sm:$0xff] }
  0x22   : > { %4455 = vmatmul.mubr.msk.bf16.vlgmr.msra.gmra.mxu1 %vm964_vm1, %v898_v49  ;;  %6781 = vst [vmem:[#allocation10_spill] sm:$0xff] %v5103_v62  ;;  %6782 = vst [vmem:[#allocation11_spill] sm:$0xff] %v5109_v1  ;;  %4776 = vmatprep.subr.msk.bf16.mxu0 %vm1013_vm0, %v5073_v47  ;;  %v5127_v9 = vsel %vm651_vm7, 1.0, %v6716_v20  ;;  %v924_v11 = vld [vmem:[%s5006_s17 + $0x51] sm:$0xff]  ;;  %v5137_v13 = vsel %vm653_vm8, 1.0, %v6716_v20  ;;  %v5140_v14 = vld [vmem:[%s5006_s17 + $0x60] sm:$0xff] }
  0x23   : > { %4458 = vmatprep.mubr.msk.bf16.mxu1 %vm964_vm1, %v899_v57  ;;  %4521 = vmatpush3.bf16.msra.mxu1 %v1847_v55  ;;  %v901_v8 = vpack.c.bf16 %v5112_v2, %v873_v3  ;;  %v359_v15 = vand.u32 15, %v239_v4  ;;  %v927_v17 = vld [vmem:[%s5006_s17 + $0x69] sm:$0xff]  ;;  %v373_v18 = vand.u32 15, %v241_v5  ;;  %v875_v19 = vmul.f32 %v5127_v9, %v5130_v10  ;;  %v5151_v23 = vld [vmem:[%s5006_s17 + $0x58] sm:$0xff]  ;;  %v5180_v49 = vld [vmem:[%s5006_s17 + $0x80] sm:$0xff]  ;;  %s4832_s8 = scalar_lea.vmem %s6662_s30, 4096 }
  0x24   : > { %4777 = vmatprep.subr.msk.bf16.mxu1 %vm1013_vm0, %v5078_v48  ;;  %v5147_v22 = vpack.c.bf16 %v925_v12, %v924_v11  ;;  %v877_v24 = vmul.f32 %v5137_v13, %v5140_v14  ;;  %v5155_v25 = vpack.c.bf16 %v927_v17, %v926_v16  ;;  %v5158_v26 = vld [vmem:[%s5006_s17 + $0x68] sm:$0xff]  ;;  %v243_v27 = vadd.s32 144, %v4991_v6  ;;  %v5170_v41 = vld [vmem:[%s5006_s17 + $0x70] sm:$0xff]  ;;  %v929_v44 = vld [vmem:[%s5006_s17 + $0x79] sm:$0xff]  ;;  %p4833_p11 = scmp.ne.s32.totalorder %s6662_s30, %s4832_s8  ;;  %s4836_s10 = sshll.u32 %s4895_s9, 4  ;;  %s4837_s10 = int_to_ptr.vmem [resolvable:$false] %s4836_s10 }
  0x25   : > { %vm655_vm9 = vcmp.ne.s32.totalorder %v359_v15, 0  ;;  %vm657_vm10 = vcmp.ne.s32.totalorder %v373_v18, 0  ;;  %v245_v29 = vadd.s32 160, %v4991_v6  ;;  %v902_v36 = vpack.c.bf16 %v5151_v23, %v875_v19  ;;  %v928_v43 = vld [vmem:[%s5006_s17 + $0x71] sm:$0xff]  ;;  %v930_v54 = vld [vmem:[%s5006_s17 + $0x81] sm:$0xff]  ;;  %v931_v55 = vld [vmem:[%s5006_s17 + $0x89] sm:$0xff]  ;;  %p4839_p0 = scmp.lt.s32.totalorder %s6662_s30, %s4837_s10 }
  0x26   : > { %4425 = vmatmul.mubr.msk.bf16.gmra.mxu0 %vm964_vm1, %v5103_v62  ;;  %6783 = vst [vmem:[#allocation12_spill] sm:$0xff] %v5147_v22  ;;  %6784 = vst [vmem:[#allocation13_spill] sm:$0xff] %v5155_v25  ;;  %v903_v39 = vpack.c.bf16 %v5158_v26, %v877_v24  ;;  %v5167_v40 = vsel %vm655_vm9, 1.0, %v6716_v20  ;;  %v5177_v45 = vsel %vm657_vm10, 1.0, %v6716_v20  ;;  %v387_v52 = vand.u32 15, %v243_v27  ;;  %v5193_v0 = vld [vmem:[%s5006_s17 + $0x78] sm:$0xff]  ;;  %p4834_p12 = pnand %p4833_p11, %p4966_p5 }
  0x27   : > { %4428 = vmatprep.mubr.msk.bf16.mxu0 %vm964_vm1, %v5109_v1  ;;  %v247_v53 = vadd.s32 176, %v4991_v6  ;;  %v401_v57 = vand.u32 15, %v245_v29  ;;  %v249_v58 = vadd.s32 192, %v4991_v6  ;;  %v879_v59 = vmul.f32 %v5167_v40, %v5170_v41  ;;  %v932_v19 = vld [vmem:[%s5006_s17 + $0x91] sm:$0xff]  ;;  %v933_v24 = vld [vmem:[%s5006_s17 + $0x99] sm:$0xff]  ;;  %s4838_s11 = scalar_lea.vmem %s4837_s10, 8192 }
  0x28   : > { %v5189_v61 = vpack.c.bf16 %v929_v44, %v928_v43  ;;  %v881_v3 = vmul.f32 %v5177_v45, %v5180_v49  ;;  %v228_v4 = vadd.s32 24, %v4991_v6  ;;  %v5198_v5 = vpack.c.bf16 %v931_v55, %v930_v54  ;;  %v935_v43 = vld [vmem:[%s5006_s17 + $0xa9] sm:$0xff]  ;;  %v5258_v12 = vld [vmem:[%s5006_s17 + $0x98] sm:$0xff]  ;;  %v5287_v56 = vld [vmem:[%s5006_s17 + $0xc0] sm:$0xff]  ;;  %p4835_p13 = pneg %p4834_p12  ;;  %p4840_p1 = scmp.lt.s32.totalorder %s4838_s11, %s4832_s8 }
  0x29   : > { %vm659_vm11 = vcmp.ne.s32.totalorder %v387_v52, 0  ;;  %v251_v11 = vadd.s32 208, %v4991_v6  ;;  %vm5204_vm12 = vcmp.ne.s32.totalorder %v401_v57, 0  ;;  %v429_v15 = vand.u32 15, %v249_v58  ;;  %v5241_v58 = vld [vmem:[%s5006_s17 + $0x3a] sm:$0xff]  ;;  %6801 = vst [vmem:[#allocation24_spill] sm:$0xff] %v5287_v56 }
  0x2a   : > { %4459 = vmatmul.mubr.msk.bf16.gmra.mxu1 %vm964_vm1, %v900_v7  ;;  %6785 = vst [vmem:[#allocation14_spill] sm:$0xff] %v5189_v61  ;;  %6786 = vst [vmem:[#allocation15_spill] sm:$0xff] %v5198_v5  ;;  %v5201_v7 = vld [vmem:[%s5006_s17 + $0x88] sm:$0xff]  ;;  %v282_v16 = vand.u32 15, %v228_v4  ;;  %v232_v17 = vadd.s32 56, %v4991_v6  ;;  %v904_v18 = vpack.c.bf16 %v5193_v0, %v879_v59  ;;  %v5216_v29 = vsel %vm659_vm11, 1.0, %v6716_v20  ;;  %p4841_p2 = por %p4840_p1, %p4839_p0 }
  0x2b   : > { %4462 = vmatprep.mubr.msk.bf16.mxu1 %vm964_vm1, %v901_v8  ;;  %v415_v8 = vand.u32 15, %v247_v53  ;;  %v905_v27 = vpack.c.bf16 %v5201_v7, %v881_v3  ;;  %v5228_v52 = vsel %vm5204_vm12, 1.0, %v6716_v20  ;;  %v5231_v53 = vld [vmem:[%s5006_s17 + $0xa0] sm:$0xff]  ;;  %v443_v55 = vand.u32 15, %v251_v11 }
  0x2c   : > { %vm740_vm13 = vcmp.ne.s32.totalorder %v282_v16, 15  ;;  %v310_v44 = vand.u32 15, %v232_v17  ;;  %6789 = vst [vmem:[#allocation16_spill] sm:$0xff] %v5228_v52  ;;  %vm665_vm15 = vcmp.ne.s32.totalorder %v429_v15, 0  ;;  %v253_v59 = vadd.s32 224, %v4991_v6  ;;  %v937_v54 = vld [vmem:[%s5006_s17 + $0xb9] sm:$0xff]  ;;  %p4842_p3 = pnand %p4841_p2, %p4835_p13 }
  0x2d   : > { %vm5233_vm14 = vcmp.ne.s32.totalorder %v415_v8, 0  ;;  %v5238_v57 = vsel %vm740_vm13, 1.0, %v6716_v20  ;;  %v5254_v11 = vpack.c.bf16 %v933_v24, %v932_v19  ;;  %v885_v16 = vmul.f32 %v5228_v52, %v5231_v53 }
  0x2e   : > { %4429 = vmatmul.mubr.msk.bf16.gmra.mxu0 %vm964_vm1, %v5147_v22  ;;  %v5246_v3 = vmul.f32 %v5238_v57, %v5241_v58  ;;  %vm744_vm2 = vcmp.ne.s32.totalorder %v310_v44, 15  ;;  %v5267_v17 = vsel %vm5233_vm14, 1.0, %v6716_v20  ;;  %v5273_v44 = vld [vmem:[%s5006_s17 + $0xb0] sm:$0xff]  ;;  %v5276_v19 = vsel %vm665_vm15, 1.0, %v6716_v20 }
  0x2f   : > { %4432 = vmatprep.mubr.msk.bf16.mxu0 %vm964_vm1, %v5155_v25  ;;  %v5252_v8 = vsel %vm744_vm2, 1.0, %v6716_v20  ;;  %6793 = vst [vmem:[#allocation18_spill] sm:$0xff] %v5254_v11  ;;  %6795 = vst [vmem:[#allocation20_spill] sm:$0xff] %v5267_v17  ;;  %vm5278_vm3 = vcmp.ne.s32.totalorder %v443_v55, 0  ;;  %v5290_v42 = vadd.s32 240, %v4991_v6  ;;  %v938_v25 = vld [vmem:[%s5006_s17 + $0xc1] sm:$0xff] }
  0x30   : > { %6792 = vst [vmem:[#allocation17_spill] sm:$0xff] %v5246_v3  ;;  %6797 = vst [vmem:[#allocation22_spill] sm:$0xff] %v5273_v44  ;;  %v457_v3 = vand.u32 15, %v253_v59  ;;  %v939_v22 = vld [vmem:[%s5006_s17 + $0xc9] sm:$0xff]  ;;  %v238_v59 = vadd.s32 104, %v4991_v6  ;;  %v240_v1 = vadd.s32 120, %v4991_v6 }
  0x31   : > { %6798 = vst [vmem:[#allocation23_spill] sm:$0xff] %v5276_v19 }
  0x32   : > { %4463 = vmatmul.mubr.msk.bf16.gmra.mxu1 %vm964_vm1, %v902_v36  ;;  %v5219_v36 = vld [vmem:[%s5006_s17 + $0x90] sm:$0xff]  ;;  %v352_v51 = vand.u32 15, %v238_v59  ;;  %v366_v28 = vand.u32 15, %v240_v1  ;;  %v5325_v59 = vpack.c.bf16 %v939_v22, %v938_v25  ;;  %vm669_vm8 = vcmp.ne.s32.totalorder %v457_v3, 0 }
  0x33   : > { %4466 = vmatprep.mubr.msk.bf16.mxu1 %vm964_vm1, %v903_v39  ;;  %v934_v39 = vld [vmem:[%s5006_s17 + $0xa1] sm:$0xff]  ;;  %v883_v4 = vmul.f32 %v5216_v29, %v5219_v36  ;;  %v5340_v22 = vld [vmem:[%s5006_s17 + $0xd0] sm:$0xff] }
  0x34   : > { %v5260_v15 = vpack.c.bf16 %v935_v43, %v934_v39  ;;  %v236_v39 = vadd.s32 88, %v4991_v6  ;;  %v936_v43 = vld [vmem:[%s5006_s17 + $0xb1] sm:$0xff]  ;;  %vm750_vm6 = vcmp.ne.s32.totalorder %v352_v51, 15  ;;  %vm752_vm7 = vcmp.ne.s32.totalorder %v366_v28, 15  ;;  %6807 = vst [vmem:[#allocation29_spill] sm:$0xff] %v5325_v59  ;;  %6810 = vst [vmem:[#allocation32_spill] sm:$0xff] %v5340_v22 }
  0x35   : > { %v906_v20 = vpack.c.bf16 %v5258_v12, %v883_v4  ;;  %v5305_v4 = vld [vmem:[%s5006_s17 + $0xb8] sm:$0xff] }
  0x36   : > { %4433 = vmatmul.mubr.msk.bf16.gmra.mxu0 %vm964_vm1, %v5189_v61  ;;  %6794 = vst [vmem:[#allocation19_spill] sm:$0xff] %v5260_v15  ;;  %v338_v55 = vand.u32 15, %v236_v39  ;;  %v887_v61 = vmul.f32 %v5267_v17, %v5273_v44  ;;  %6802 = vst [vmem:[#allocation25_spill] sm:$0xff] %v5305_v4  ;;  %v6803_v39 = vmov 0.0   ;;  %v5316_v17 = vpack.c.bf16 %v937_v54, %v936_v43 }
  0x37   : > { %4436 = vmatprep.mubr.msk.bf16.mxu0 %vm964_vm1, %v5198_v5  ;;  %v5331_v1 = vsel %vm752_vm7, 1.0, %v6803_v39  ;;  %v5337_v28 = vsel %vm5278_vm3, 1.0, %v6803_v39  ;;  %v246_v54 = vadd.s32 168, %v4991_v6  ;;  %v5354_v24 = vsel %vm669_vm8, 1.0, %v6803_v39 }
  0x38   : > { %vm748_vm5 = vcmp.ne.s32.totalorder %v338_v55, 15  ;;  %6805 = vst [vmem:[#allocation27_spill] sm:$0xff] %v5316_v17  ;;  %6808 = vst [vmem:[#allocation30_spill] sm:$0xff] %v5331_v1  ;;  %v908_v43 = vpack.c.bf16 %v5305_v4, %v887_v61  ;;  %v940_v61 = vld [vmem:[%s5006_s17 + $0xd1] sm:$0xff] }
  0x39   : > { %v5313_v62 = vsel %vm748_vm5, 1.0, %v6803_v39  ;;  %6809 = vst [vmem:[#allocation31_spill] sm:$0xff] %v5337_v28  ;;  %6811 = vst [vmem:[#allocation33_spill] sm:$0xff] %v5354_v24 }
  0x3a   : > { %4467 = vmatmul.mubr.msk.bf16.gmra.mxu1 %vm964_vm1, %v904_v18  ;;  %v5270_v18 = vld [vmem:[%s5006_s17 + $0xa8] sm:$0xff]  ;;  %6804 = vst [vmem:[#allocation26_spill] sm:$0xff] %v5313_v62 }
  0x3b   : > { %4470 = vmatprep.mubr.msk.bf16.mxu1 %vm964_vm1, %v905_v27  ;;  %6796 = vst [vmem:[#allocation21_spill] sm:$0xff] %v5270_v18  ;;  %v234_v27 = vadd.s32 72, %v4991_v6  ;;  %v907_v5 = vpack.c.bf16 %v5270_v18, %v885_v16  ;;  %v242_v16 = vadd.s32 136, %v4991_v6  ;;  %v244_v18 = vadd.s32 152, %v4991_v6 }
  0x3d   : > { %v324_v35 = vand.u32 15, %v234_v27  ;;  %v226_v27 = vadd.s32 8, %v4991_v6  ;;  %v380_v55 = vand.u32 15, %v242_v16  ;;  %v394_v51 = vand.u32 15, %v244_v18  ;;  %v941_v18 = vld [vmem:[%s5006_s17 + $0xd9] sm:$0xff] }
  0x3e   : > { %4437 = vmatmul.mubr.msk.bf16.gmra.mxu0 %vm964_vm1, %v5254_v11  ;;  %v471_v16 = vand.u32 15, %v5290_v42  ;;  %v250_v42 = vadd.s32 200, %v4991_v6  ;;  %v5375_v4 = vpack.c.bf16 %v941_v18, %v940_v61  ;;  %v1391_v18 = vld [vmem:[%s5006_s17 + $0xa] sm:$0xff] }
  0x3f   : > { %4440 = vmatprep.mubr.msk.bf16.mxu0 %vm964_vm1, %v5260_v15  ;;  %vm746_vm4 = vcmp.ne.s32.totalorder %v324_v35, 15  ;;  %v5319_v15 = vld [vmem:[%s5006_s17 + $0xc8] sm:$0xff]  ;;  %v889_v35 = vmul.f32 %v5276_v19, %v5287_v56  ;;  %vm754_vm9 = vcmp.ne.s32.totalorder %v380_v55, 15  ;;  %v268_v25 = vand.u32 15, %v226_v27  ;;  %v5357_v27 = vld [vmem:[%s5006_s17 + $0xe0] sm:$0xff]  ;;  %v5371_v56 = vld [vmem:[%s5006_s17 + $0xd8] sm:$0xff] }
  0x40   : > { %v5310_v11 = vsel %vm746_vm4, 1.0, %v6803_v39  ;;  %6806 = vst [vmem:[#allocation28_spill] sm:$0xff] %v5319_v15  ;;  %vm756_vm10 = vcmp.ne.s32.totalorder %v394_v51, 15  ;;  %6812 = vst [vmem:[#allocation34_spill] sm:$0xff] %v5357_v27  ;;  %v891_v19 = vmul.f32 %v5337_v28, %v5340_v22  ;;  %v943_v51 = vld [vmem:[%s5006_s17 + $0xe9] sm:$0xff]  ;;  %v893_v28 = vmul.f32 %v5354_v24, %v5357_v27 }
  0x41   : > { %v909_v3 = vpack.c.bf16 %v5319_v15, %v889_v35  ;;  %v5361_v55 = vsel %vm756_vm10, 1.0, %v6803_v39  ;;  %v942_v35 = vld [vmem:[%s5006_s17 + $0xe1] sm:$0xff]  ;;  %v248_v15 = vadd.s32 184, %v4991_v6  ;;  %6814 = vst [vmem:[#allocation36_spill] sm:$0xff] %v5371_v56  ;;  %vm738_vm11 = vcmp.ne.s32.totalorder %v268_v25, 15  ;;  %6815 = vst [vmem:[#allocation37_spill] sm:$0xff] %v5375_v4 }
  0x42   : > { %4471 = vmatmul.mubr.msk.bf16.gmra.mxu1 %vm964_vm1, %v906_v20  ;;  %v5328_v20 = vsel %vm750_vm6, 1.0, %v6803_v39  ;;  %6813 = vst [vmem:[#allocation35_spill] sm:$0xff] %v5361_v55  ;;  %v5383_v52 = vpack.c.bf16 %v943_v51, %v942_v35  ;;  %v5386_v25 = vld [vmem:[%s5006_s17 + $0xe8] sm:$0xff]  ;;  %vm671_vm13 = vcmp.ne.s32.totalorder %v471_v16, 0  ;;  %v910_v61 = vpack.c.bf16 %v5371_v56, %v891_v19  ;;  %v5404_v51 = vld [vmem:[%s5006_s17 + $0xf0] sm:$0xff] }
  0x43   : > { %4474 = vmatprep.mubr.msk.bf16.mxu1 %vm964_vm1, %v907_v5  ;;  %v5343_v5 = vsel %vm754_vm9, 1.0, %v6803_v39  ;;  %6817 = vst [vmem:[#allocation39_spill] sm:$0xff] %v5386_v25  ;;  %v254_v24 = vadd.s32 232, %v4991_v6  ;;  %v911_v19 = vpack.c.bf16 %v5386_v25, %v893_v28  ;;  %v5401_v16 = vsel %vm671_vm13, 1.0, %v6803_v39  ;;  %6821 = vst [vmem:[#allocation43_spill] sm:$0xff] %v5404_v51 }
  0x44   : > { %6816 = vst [vmem:[#allocation38_spill] sm:$0xff] %v5383_v52  ;;  %6820 = vst [vmem:[#allocation42_spill] sm:$0xff] %v5401_v16  ;;  %v895_v25 = vmul.f32 %v5401_v16, %v5404_v51  ;;  %v1403_v51 = vld [vmem:[%s5006_s17 + $0x6a] sm:$0xff] }
  0x46   : > { %4441 = vmatmul.mubr.msk.bf16.gmra.mxu0 %vm964_vm1, %v5316_v17  ;;  %v408_v17 = vand.u32 15, %v246_v54  ;;  %v252_v54 = vadd.s32 216, %v4991_v6 }
  0x47   : > { %4444 = vmatprep.mubr.msk.bf16.mxu0 %vm964_vm1, %v5325_v59  ;;  %v230_v59 = vadd.s32 40, %v4991_v6 }
  0x48   : > { %vm758_vm12 = vcmp.ne.s32.totalorder %v408_v17, 15  ;;  %v436_v17 = vand.u32 15, %v250_v42  ;;  %v450_v44 = vand.u32 15, %v252_v54  ;;  %v945_v54 = vld [vmem:[%s5006_s17 + $0xf9] sm:$0xff] }
  0x49   : > { %v5381_v22 = vsel %vm758_vm12, 1.0, %v6803_v39 }
  0x4a   : > { %4475 = vmatmul.mubr.msk.bf16.gmra.mxu1 %vm964_vm1, %v908_v43  ;;  %v422_v43 = vand.u32 15, %v248_v15  ;;  %v296_v15 = vand.u32 15, %v230_v59  ;;  %vm762_vm15 = vcmp.ne.s32.totalorder %v436_v17, 15  ;;  %vm764_vm2 = vcmp.ne.s32.totalorder %v450_v44, 15  ;;  %v944_v44 = vld [vmem:[%s5006_s17 + $0xf1] sm:$0xff]  ;;  %v1390_v17 = vld [vmem:[%s5006_s17 + $0x2] sm:$0xff] }
  0x4b   : > { %4478 = vmatprep.mubr.msk.bf16.mxu1 %vm964_vm1, %v909_v3  ;;  %v5390_v3 = vsel %vm738_vm11, 1.0, %v6803_v39  ;;  %v5407_v42 = vsel %vm762_vm15, 1.0, %v6803_v39  ;;  %v5410_v59 = vsel %vm764_vm2, 1.0, %v6803_v39  ;;  %v5424_v27 = vpack.c.bf16 %v945_v54, %v944_v44  ;;  %v5452_v54 = vld [vmem:[%s5006_s17 + $0x42] sm:$0xff] }
  0x4c   : > { %6818 = vst [vmem:[#allocation40_spill] sm:$0xff] %v5390_v3  ;;  %vm760_vm14 = vcmp.ne.s32.totalorder %v422_v43, 15  ;;  %6822 = vst [vmem:[#allocation44_spill] sm:$0xff] %v5407_v42  ;;  %v1423_v28 = vmul.f32 %v5390_v3, %v1391_v18  ;;  %v464_v43 = vand.u32 15, %v254_v24  ;;  %vm742_vm3 = vcmp.ne.s32.totalorder %v296_v15, 15  ;;  %v5428_v24 = vld [vmem:[%s5006_s17 + $0xf8] sm:$0xff] }
  0x4d   : > { %v5395_v35 = vsel %vm760_vm14, 1.0, %v6803_v39  ;;  %6823 = vst [vmem:[#allocation45_spill] sm:$0xff] %v5410_v59  ;;  %6824 = vst [vmem:[#allocation46_spill] sm:$0xff] %v5424_v27  ;;  %v1395_v18 = vld [vmem:[%s5006_s17 + $0x2a] sm:$0xff]  ;;  %v5435_v15 = vld [vmem:[%s5006_s17 + $0x1a] sm:$0xff]  ;;  %v912_v44 = vpack.c.bf16 %v5428_v24, %v895_v25  ;;  %v1752_v42 = vmul.f32 %v5039_v34, %v5052_v38  ;;  %v2467_v34 = vsel %vm1013_vm0, %v5078_v48, 0 }
  0x4e   : > { %6819 = vst [vmem:[#allocation41_spill] sm:$0xff] %v5395_v35  ;;  %4445 = vmatmul.mubr.msk.bf16.gmra.mxu0 %vm964_vm1, %v5375_v4  ;;  %v256_v4 = vadd.s32 248, %v4991_v6  ;;  %vm766_vm4 = vcmp.ne.s32.totalorder %v464_v43, 15  ;;  %6825 = vst [vmem:[#allocation47_spill] sm:$0xff] %v5428_v24  ;;  %v1454_v3 = vpack.c.bf16 %v1423_v28, %v1390_v17  ;;  %v1399_v43 = vld [vmem:[%s5006_s17 + $0x4a] sm:$0xff]  ;;  %v5472_v24 = vld [vmem:[%s5006_s17 + $0x12] sm:$0xff]  ;;  %v1756_v48 = vmul.f32 %v5107_v63, %v5130_v10 }
  0x4f   : > { %4448 = vmatprep.mubr.msk.bf16.mxu0 %vm964_vm1, %v5383_v52  ;;  %v1748_v52 = vmul.f32 %v5013_v21, %v5027_v30  ;;  %v5432_v6 = vsel %vm766_vm4, 1.0, %v6803_v39  ;;  %6827 = vst [vmem:[#allocation49_spill] sm:$0xff] %v5435_v15  ;;  %v5439_v21 = vmul.f32 %v5238_v57, %v1395_v18  ;;  %v5442_v30 = vsel %vm742_vm3, 1.0, %v6803_v39  ;;  %v5466_v25 = vld [vmem:[%s5006_s17 + $0x8a] sm:$0xff] }
  0x50   : > { %6826 = vst [vmem:[#allocation48_spill] sm:$0xff] %v5432_v6  ;;  %6829 = vst [vmem:[#allocation51_spill] sm:$0xff] %v5442_v30  ;;  %v1427_v17 = vmul.f32 %v5442_v30, %v1395_v18  ;;  %v5506_v30 = vld [vmem:[%s5006_s17 + $0xa2] sm:$0xff]  ;;  %v1435_v10 = vmul.f32 %v5328_v20, %v1403_v51 }
  0x51   : > { %6828 = vst [vmem:[#allocation50_spill] sm:$0xff] %v5439_v21  ;;  %v1780_v16 = vpack.c.bf16 %v5036_v33, %v1748_v52  ;;  %v5479_v21 = vld [vmem:[%s5006_s17 + $0xca] sm:$0xff]  ;;  %v5482_v33 = vmul.f32 %v5313_v62, %v1403_v51  ;;  %v5486_v52 = vmul.f32 %v5331_v1, %v5466_v25 }
  0x52   : > { %4479 = vmatmul.mubr.msk.bf16.gmra.mxu1 %vm964_vm1, %v910_v61  ;;  %v478_v61 = vand.u32 15, %v256_v4  ;;  %v5448_v4 = vmul.f32 %v5252_v8, %v1399_v43  ;;  %v5500_v18 = vmul.f32 %v5395_v35, %v5479_v21 }
  0x53   : > { %4482 = vmatprep.mubr.msk.bf16.mxu1 %vm964_vm1, %v911_v19  ;;  %v5445_v19 = vld [vmem:[%s5006_s17 + $0x22] sm:$0xff] }
  0x54   : > { %vm768_vm5 = vcmp.ne.s32.totalorder %v478_v61, 15  ;;  %6830 = vst [vmem:[#allocation52_spill] sm:$0xff] %v5448_v4  ;;  %v1425_v61 = vmul.f32 %v5238_v57, %v5435_v15  ;;  %v5489_v57 = vld [vmem:[%s5006_s17 + $0x62] sm:$0xff]  ;;  %v1750_v4 = vmul.f32 %v5033_v32, %v5030_v31  ;;  %v5520_v31 = vld [vmem:[%s5006_s17 + $0xea] sm:$0xff] }
  0x55   : > { %v5455_v28 = vsel %vm768_vm5, 1.0, %v6803_v39  ;;  %v5492_v39 = vld [vmem:[%s5006_s17 + $0x82] sm:$0xff]  ;;  %v5529_v6 = vmul.f32 %v5410_v59, %v5520_v31  ;;  %v5540_v32 = vld [vmem:[%s6710_s1 + $0xc] sm:$0x3] }
  0x56   : > { %6831 = vst [vmem:[#allocation53_spill] sm:$0xff] %v5455_v28  ;;  %4449 = vmatmul.mubr.msk.bf16.gmra.mxu0 %vm964_vm1, %v5424_v27  ;;  %v5476_v27 = vld [vmem:[%s5006_s17 + $0xaa] sm:$0xff]  ;;  %v5509_v15 = vld [vmem:[%s5006_s17 + $0xc2] sm:$0xff]  ;;  %v1455_v56 = vpack.c.bf16 %v1425_v61, %v5472_v24  ;;  %v1456_v28 = vpack.c.bf16 %v1427_v17, %v5445_v19  ;;  %v1781_v38 = vpack.c.bf16 %v5049_v37, %v1750_v4  ;;  %v5550_v37 = vld [vmem:[%s5006_s17 + $0x32] sm:$0xff] }
  0x57   : > { %4488 = vmatprep.mubr.msk.bf16.mxu0 %vm964_vm1, %v1454_v3  ;;  %v5496_v3 = vmul.f32 %v5361_v55, %v5476_v27  ;;  %v5534_v61 = vld [vmem:[%s5006_s17 + $0xe2] sm:$0xff]  ;;  %v1429_v17 = vmul.f32 %v5252_v8, %v5241_v58  ;;  %v1431_v4 = vmul.f32 %v5310_v11, %v1399_v43 }
  0x59   : > { %v1458_v43 = vpack.c.bf16 %v1431_v4, %v5452_v54  ;;  %v1760_v4 = vmul.f32 %v5137_v13, %v5170_v41  ;;  %v1439_v41 = vmul.f32 %v5343_v5, %v5466_v25 }
  0x5a   : > { %4483 = vmatmul.mubr.msk.bf16.gmra.mxu1 %vm964_vm1, %v912_v44  ;;  %v1421_v44 = vld [vmem:[%s5006_s17 + $0xfa] sm:$0xff] }
  0x5b   : > { %4522 = vmatprep.mubr.msk.bf16.mxu1 %vm964_vm1, %v1780_v16  ;;  %v2141_v16 = vsel %vm1013_vm0, %v5073_v47, 0  ;;  %v1782_v47 = vpack.c.bf16 %v5082_v50, %v1752_v42  ;;  %v1754_v42 = vmul.f32 %v5068_v46, %v5096_v60 }
  0x5e   : > { %4489 = vmatmul.mubr.msk.bf16.vlgmr.msra.gmra.mxu0 %vm964_vm1, %v1455_v56  ;;  %v5560_v56 = vld [vmem:[%s6710_s1 + $0xe] sm:$0x3] }
  0x5f   : > { %4555 = vmatpush3.bf16.msra.mxu0 %v2141_v16  ;;  %4492 = vmatprep.mubr.msk.bf16.mxu0 %vm964_vm1, %v1456_v28  ;;  %v1457_v28 = vpack.c.bf16 %v1429_v17, %v5550_v37  ;;  %v5571_v16 = vld [vmem:[%s5006_s17 + $0x5a] sm:$0xff]  ;;  %v1784_v17 = vpack.c.bf16 %v5151_v23, %v1756_v48  ;;  %v1460_v23 = vpack.c.bf16 %v1435_v10, %v5489_v57  ;;  %v5603_v48 = vld [vmem:[%s5006_s17 + $0x72] sm:$0xff] }
  0x60   : > { %4778 = vmatprep.subr.msk.bf16.mxu0 %vm1013_vm0, %v5540_v32  ;;  %v1433_v60 = vmul.f32 %v5313_v62, %v5571_v16  ;;  %v5625_v10 = vld [vmem:[%s5006_s17 + $0x92] sm:$0xff]  ;;  %v6854_v62 = vld [vmem:[#allocation5_spill] sm:$0xff] }
  0x62   : > { %4523 = vmatmul.mubr.msk.bf16.vlgmr.msra.gmra.mxu1 %vm964_vm1, %v1781_v38  ;;  %v1783_v38 = vpack.c.bf16 %v5112_v2, %v1754_v42  ;;  %v5594_v42 = vld [vmem:[%s5006_s17 + $0x7a] sm:$0xff] }
  0x63   : > { %4526 = vmatprep.mubr.msk.bf16.mxu1 %vm964_vm1, %v1782_v47  ;;  %4589 = vmatpush3.bf16.msra.mxu1 %v2467_v34  ;;  %v5582_v34 = vld [vmem:[%s5006_s17 + $0x52] sm:$0xff]  ;;  %v1758_v47 = vmul.f32 %v5127_v9, %v5140_v14  ;;  %v1437_v51 = vmul.f32 %v5331_v1, %v5594_v42  ;;  %v1786_v14 = vpack.c.bf16 %v5193_v0, %v1760_v4 }
  0x64   : > { %4779 = vmatprep.subr.msk.bf16.mxu1 %vm1013_vm0, %v5560_v56  ;;  %v1459_v2 = vpack.c.bf16 %v1433_v60, %v5582_v34  ;;  %v1764_v0 = vmul.f32 %v5177_v45, %v5219_v36  ;;  %v5616_v60 = vld [vmem:[%s5006_s17 + $0x9a] sm:$0xff]  ;;  %v1443_v36 = vmul.f32 %v5381_v22, %v5476_v27 }
  0x65   : > { %v1441_v25 = vmul.f32 %v5361_v55, %v5616_v60  ;;  %v6833_v4 = vld [vmem:[#allocation16_spill] sm:$0xff]  ;;  %v6850_v55 = vld [vmem:[#allocation47_spill] sm:$0xff] }
  0x66   : > { %4493 = vmatmul.mubr.msk.bf16.gmra.mxu0 %vm964_vm1, %v1457_v28  ;;  %v1785_v28 = vpack.c.bf16 %v5158_v26, %v1758_v47  ;;  %v1762_v26 = vmul.f32 %v5167_v40, %v5180_v49  ;;  %v1788_v49 = vpack.c.bf16 %v5258_v12, %v1764_v0 }
  0x67   : > { %4496 = vmatprep.mubr.msk.bf16.mxu0 %vm964_vm1, %v1458_v43  ;;  %v1461_v43 = vpack.c.bf16 %v1437_v51, %v5603_v48  ;;  %v1463_v47 = vpack.c.bf16 %v1441_v25, %v5625_v10  ;;  %v6834_v51 = vld [vmem:[#allocation21_spill] sm:$0xff] }
  0x6a   : > { %4527 = vmatmul.mubr.msk.bf16.gmra.mxu1 %vm964_vm1, %v1783_v38  ;;  %v1462_v38 = vpack.c.bf16 %v1439_v41, %v5492_v39 }
  0x6b   : > { %4530 = vmatprep.mubr.msk.bf16.mxu1 %vm964_vm1, %v1784_v17  ;;  %v1787_v17 = vpack.c.bf16 %v5201_v7, %v1762_v26  ;;  %v1766_v7 = vmul.f32 %v5216_v29, %v5231_v53  ;;  %v6835_v53 = vld [vmem:[#allocation25_spill] sm:$0xff]  ;;  %v5647_v26 = vld [vmem:[%s5006_s17 + $0xb2] sm:$0xff] }
  0x6e   : > { %4497 = vmatmul.mubr.msk.bf16.gmra.mxu0 %vm964_vm1, %v1459_v2  ;;  %v6832_v2 = vld [vmem:[#allocation22_spill] sm:$0xff] }
  0x6f   : > { %4500 = vmatprep.mubr.msk.bf16.mxu0 %vm964_vm1, %v1460_v23  ;;  %v1768_v12 = vmul.f32 %v6833_v4, %v6832_v2  ;;  %v1464_v23 = vpack.c.bf16 %v1443_v36, %v5506_v30  ;;  %v6839_v36 = vld [vmem:[#allocation32_spill] sm:$0xff] }
  0x71   : > { %v1790_v41 = vpack.c.bf16 %v6835_v53, %v1768_v12  ;;  %v5660_v12 = vld [vmem:[%s5006_s17 + $0xda] sm:$0xff]  ;;  %v5669_v53 = vld [vmem:[%s5006_s17 + $0xd2] sm:$0xff] }
  0x72   : > { %4531 = vmatmul.mubr.msk.bf16.gmra.mxu1 %vm964_vm1, %v1785_v28  ;;  %v5638_v28 = vld [vmem:[%s5006_s17 + $0xba] sm:$0xff] }
  0x73   : > { %4534 = vmatprep.mubr.msk.bf16.mxu1 %vm964_vm1, %v1786_v14  ;;  %v1789_v14 = vpack.c.bf16 %v6834_v51, %v1766_v7  ;;  %v1445_v27 = vmul.f32 %v5395_v35, %v5638_v28  ;;  %v6840_v7 = vld [vmem:[#allocation23_spill] sm:$0xff] }
  0x76   : > { %4501 = vmatmul.mubr.msk.bf16.gmra.mxu0 %vm964_vm1, %v1461_v43  ;;  %v6836_v43 = vld [vmem:[#allocation44_spill] sm:$0xff] }
  0x77   : > { %4504 = vmatprep.mubr.msk.bf16.mxu0 %vm964_vm1, %v1462_v38  ;;  %v1447_v0 = vmul.f32 %v6836_v43, %v5479_v21  ;;  %v6837_v38 = vld [vmem:[#allocation24_spill] sm:$0xff]  ;;  %v1449_v21 = vmul.f32 %v5410_v59, %v5660_v12  ;;  %v6848_v59 = vld [vmem:[#allocation39_spill] sm:$0xff] }
  0x79   : > { %v1466_v2 = vpack.c.bf16 %v1447_v0, %v5509_v15 }
  0x7a   : > { %4535 = vmatmul.mubr.msk.bf16.gmra.mxu1 %vm964_vm1, %v1787_v17  ;;  %v6838_v17 = vld [vmem:[#allocation20_spill] sm:$0xff] }
  0x7b   : > { %4538 = vmatprep.mubr.msk.bf16.mxu1 %vm964_vm1, %v1788_v49  ;;  %v1770_v25 = vmul.f32 %v6838_v17, %v6837_v38  ;;  %v1465_v49 = vpack.c.bf16 %v1445_v27, %v5647_v26  ;;  %v6844_v38 = vld [vmem:[#allocation34_spill] sm:$0xff] }
  0x7e   : > { %4505 = vmatmul.mubr.msk.bf16.gmra.mxu0 %vm964_vm1, %v1463_v47  ;;  %v1772_v47 = vmul.f32 %v6840_v7, %v6839_v36 }
  0x7f   : > { %4508 = vmatprep.mubr.msk.bf16.mxu0 %vm964_vm1, %v1464_v23  ;;  %v6841_v23 = vld [vmem:[#allocation28_spill] sm:$0xff] }
  0x80   : > { %v1791_v51 = vpack.c.bf16 %v6841_v23, %v1770_v25  ;;  %v6845_v25 = vld [vmem:[#allocation31_spill] sm:$0xff] }
  0x81   : > { %v1774_v36 = vmul.f32 %v6845_v25, %v6844_v38  ;;  %v6846_v23 = vld [vmem:[#allocation43_spill] sm:$0xff]  ;;  %v5687_v38 = vld [vmem:[%s5006_s17 + $0x100] sm:$0xff] }
  0x82   : > { %4539 = vmatmul.mubr.msk.bf16.gmra.mxu1 %vm964_vm1, %v1789_v14  ;;  %v6842_v14 = vld [vmem:[#allocation36_spill] sm:$0xff] }
  0x83   : > { %4542 = vmatprep.mubr.msk.bf16.mxu1 %vm964_vm1, %v1790_v41  ;;  %v1792_v27 = vpack.c.bf16 %v6842_v14, %v1772_v47  ;;  %v6843_v41 = vld [vmem:[#allocation48_spill] sm:$0xff]  ;;  %v6847_v47 = vld [vmem:[#allocation33_spill] sm:$0xff]  ;;  %v1793_v35 = vpack.c.bf16 %v6848_v59, %v1774_v36  ;;  %v5699_v59 = vld [vmem:[%s5006_s17 + $0x108] sm:$0xff] }
  0x84   : > { %v1451_v0 = vmul.f32 %v6843_v41, %v5520_v31  ;;  %v1776_v14 = vmul.f32 %v6847_v47, %v6846_v23  ;;  %v6849_v31 = vld [vmem:[#allocation53_spill] sm:$0xff] }
  0x85   : > { %v6852_v36 = vld [vmem:[#allocation49_spill] sm:$0xff] }
  0x86   : > { %4509 = vmatmul.mubr.msk.bf16.gmra.mxu0 %vm964_vm1, %v1465_v49  ;;  %v1467_v49 = vpack.c.bf16 %v1449_v21, %v5669_v53  ;;  %v1794_v1 = vpack.c.bf16 %v6850_v55, %v1776_v14  ;;  %v5691_v21 = vld [vmem:[%s5006_s17 + $0xf2] sm:$0xff] }
  0x87   : > { %4512 = vmatprep.mubr.msk.bf16.mxu0 %vm964_vm1, %v1466_v2  ;;  %v1468_v2 = vpack.c.bf16 %v1451_v0, %v5534_v61 }
  0x8a   : > { %4543 = vmatmul.mubr.msk.bf16.gmra.mxu1 %vm964_vm1, %v1791_v51  ;;  %v1453_v51 = vmul.f32 %v6849_v31, %v1421_v44 }
  0x8b   : > { %4546 = vmatprep.mubr.msk.bf16.mxu1 %vm964_vm1, %v1792_v27  ;;  %v6851_v27 = vld [vmem:[#allocation42_spill] sm:$0xff] }
  0x8c   : > { %v1778_v0 = vmul.f32 %v6851_v27, %v5687_v38  ;;  %v1469_v23 = vpack.c.bf16 %v1453_v51, %v5691_v21  ;;  %v2793_v51 = vsel %vm1013_vm0, %v5540_v32, 0  ;;  %v6858_v32 = vld [vmem:[#allocation50_spill] sm:$0xff] }
  0x8e   : > { %4513 = vmatmul.mubr.msk.bf16.gmra.mxu0 %vm964_vm1, %v1467_v49  ;;  %v6853_v49 = vld [vmem:[#allocation40_spill] sm:$0xff]  ;;  %v1795_v14 = vpack.c.bf16 %v5699_v59, %v1778_v0  ;;  %v5717_v0 = vld [vmem:[%s6710_s1 + $0x10] sm:$0x3] }
  0x8f   : > { %4516 = vmatprep.mubr.msk.bf16.mxu0 %vm964_vm1, %v1468_v2  ;;  %v2369_v55 = vmul.f32 %v6853_v49, %v6852_v36  ;;  %v6859_v36 = vpack.c.bf16 %v6858_v32, %v5445_v19  ;;  %v2381_v19 = vmul.f32 %v5328_v20, %v5594_v42  ;;  %v5798_v32 = vld [vmem:[%s5006_s17 + $0x10a] sm:$0xff] }
  0x91   : > { %v2400_v2 = vpack.c.bf16 %v2369_v55, %v5472_v24  ;;  %v6857_v24 = vld [vmem:[#allocation10_spill] sm:$0xff]  ;;  %v6860_v55 = vld [vmem:[#allocation11_spill] sm:$0xff] }
  0x92   : > { %4547 = vmatmul.mubr.msk.bf16.gmra.mxu1 %vm964_vm1, %v1793_v35 }
  0x93   : > { %4550 = vmatprep.mubr.msk.bf16.mxu1 %vm964_vm1, %v1794_v1  ;;  %v6855_v1 = vld [vmem:[#allocation51_spill] sm:$0xff] }
  0x94   : > { %v2373_v35 = vmul.f32 %v6855_v1, %v5241_v58  ;;  %v3087_v58 = vsel %vm1013_vm0, %v5560_v56, 0  ;;  %v6861_v56 = vld [vmem:[#allocation12_spill] sm:$0xff] }
  0x96   : > { %4517 = vmatmul.mubr.msk.bf16.gmra.mxu0 %vm964_vm1, %v1469_v23  ;;  %v6856_v23 = vld [vmem:[#allocation9_spill] sm:$0xff] }
  0x97   : > { %4556 = vmatprep.mubr.msk.bf16.mxu0 %vm964_vm1, %v6854_v62  ;;  %v2402_v62 = vpack.c.bf16 %v2373_v35, %v5550_v37  ;;  %v2377_v37 = vmul.f32 %v5310_v11, %v5571_v16  ;;  %v6864_v16 = vld [vmem:[#allocation13_spill] sm:$0xff] }
  0x9a   : > { %4551 = vmatmul.mubr.msk.bf16.gmra.mxu1 %vm964_vm1, %v1795_v14  ;;  %v2404_v14 = vpack.c.bf16 %v2377_v37, %v5582_v34  ;;  %v6866_v34 = vpack.c.bf16 %v5482_v33, %v5489_v57  ;;  %v2389_v33 = vmul.f32 %v5381_v22, %v5638_v28  ;;  %v6870_v57 = vld [vmem:[#allocation19_spill] sm:$0xff]  ;;  %v6873_v28 = vld [vmem:[#allocation29_spill] sm:$0xff]  ;;  %v2663_v37 = vld [vmem:[%s5006_s17 + $0x28] sm:$0xff] }
  0x9b   : > { %4590 = vmatprep.mubr.msk.bf16.mxu1 %vm964_vm1, %v2400_v2  ;;  %v6862_v2 = vld [vmem:[#allocation52_spill] sm:$0xff] }
  0x9c   : > { %v6863_v35 = vpack.c.bf16 %v6862_v2, %v5452_v54  ;;  %v2385_v54 = vmul.f32 %v5343_v5, %v5616_v60  ;;  %v2410_v60 = vpack.c.bf16 %v2389_v33, %v5647_v26  ;;  %v2993_v33 = vld [vmem:[%s5006_s17 + $0x49] sm:$0xff] }
  0x9e   : > { %4557 = vmatmul.mubr.msk.bf16.vlgmr.msra.gmra.mxu0 %vm964_vm1, %v6856_v23  ;;  %v6865_v23 = vld [vmem:[#allocation14_spill] sm:$0xff]  ;;  %v2408_v42 = vpack.c.bf16 %v2385_v54, %v5625_v10  ;;  %v6871_v10 = vld [vmem:[#allocation27_spill] sm:$0xff] }
  0x9f   : > { %4623 = vmatpush3.bf16.msra.mxu0 %v2793_v51  ;;  %4560 = vmatprep.mubr.msk.bf16.mxu0 %vm964_vm1, %v6857_v24  ;;  %v2406_v51 = vpack.c.bf16 %v2381_v19, %v5603_v48  ;;  %v6868_v24 = vld [vmem:[#allocation18_spill] sm:$0xff]  ;;  %v6869_v48 = vpack.c.bf16 %v5486_v52, %v5492_v39  ;;  %v6872_v39 = vpack.c.bf16 %v5496_v3, %v5506_v30  ;;  %v2990_v54 = vld [vmem:[%s5006_s17 + $0x31] sm:$0xff] }
  0xa0   : > { %4780 = vmatprep.subr.msk.bf16.mxu0 %vm1013_vm0, %v5717_v0  ;;  %v2393_v52 = vmul.f32 %v6836_v43, %v5660_v12  ;;  %v6875_v30 = vpack.c.bf16 %v5500_v18, %v5509_v15  ;;  %v2397_v3 = vmul.f32 %v6843_v41, %v1421_v44  ;;  %v6876_v12 = vld [vmem:[#allocation38_spill] sm:$0xff]  ;;  %v2399_v44 = vmul.f32 %v6849_v31, %v5798_v32 }
  0xa1   : > { %v2072_v15 = vld [vmem:[%s5006_s17 + $0x101] sm:$0xff]  ;;  %v2073_v18 = vld [vmem:[%s5006_s17 + $0x109] sm:$0xff] }
  0xa2   : > { %4591 = vmatmul.mubr.msk.bf16.vlgmr.msra.gmra.mxu1 %vm964_vm1, %v6859_v36  ;;  %v2412_v26 = vpack.c.bf16 %v2393_v52, %v5669_v53  ;;  %v2414_v53 = vpack.c.bf16 %v2397_v3, %v5691_v21  ;;  %v6877_v36 = vld [vmem:[#allocation46_spill] sm:$0xff]  ;;  %v6881_v52 = vld [vmem:[#allocation8_spill] sm:$0xff] }
  0xa3   : > { %4594 = vmatprep.mubr.msk.bf16.mxu1 %vm964_vm1, %v2402_v62  ;;  %4657 = vmatpush3.bf16.msra.mxu1 %v3087_v58  ;;  %v6867_v62 = vld [vmem:[#allocation15_spill] sm:$0xff]  ;;  %v6874_v58 = vld [vmem:[#allocation37_spill] sm:$0xff] }
  0xa4   : > { %v5815_v21 = vld [vmem:[%s5006_s17 + $0x102] sm:$0xff] }
  0xa5   : > { %v2415_v19 = vpack.c.bf16 %v2399_v44, %v5815_v21  ;;  %v2672_v44 = vld [vmem:[%s5006_s17 + $0x70] sm:$0xff] }
  0xa6   : > { %4561 = vmatmul.mubr.msk.bf16.gmra.mxu0 %vm964_vm1, %v6860_v55  ;;  %v6878_v55 = vpack.c.bf16 %v5529_v6, %v5534_v61  ;;  %v2989_v6 = vld [vmem:[%s5006_s17 + $0x29] sm:$0xff]  ;;  %v2666_v61 = vld [vmem:[%s5006_s17 + $0x40] sm:$0xff] }
  0xa7   : > { %4564 = vmatprep.mubr.msk.bf16.mxu0 %vm964_vm1, %v6861_v56  ;;  %v6879_v56 = vld [vmem:[#allocation7_spill] sm:$0xff] }
  0xa8   : > { %v2726_v2 = vpack.c.bf16 %v2663_v37, %v6879_v56  ;;  %v2996_v56 = vld [vmem:[%s5006_s17 + $0x61] sm:$0xff] }
  0xaa   : > { %4595 = vmatmul.mubr.msk.bf16.gmra.mxu1 %vm964_vm1, %v6863_v35  ;;  %v2988_v35 = vld [vmem:[%s5006_s17 + $0x21] sm:$0xff] }
  0xab   : > { %4598 = vmatprep.mubr.msk.bf16.mxu1 %vm964_vm1, %v2404_v14  ;;  %v5811_v14 = vpack.c.bf16 %v2073_v18, %v2072_v15  ;;  %v2994_v15 = vld [vmem:[%s5006_s17 + $0x51] sm:$0xff]  ;;  %v2995_v18 = vld [vmem:[%s5006_s17 + $0x59] sm:$0xff] }
  0xae   : > { %4565 = vmatmul.mubr.msk.bf16.gmra.mxu0 %vm964_vm1, %v6864_v16  ;;  %v3020_v16 = vpack.c.bf16 %v2989_v6, %v2988_v35  ;;  %v2674_v6 = vld [vmem:[%s5006_s17 + $0x80] sm:$0xff] }
  0xaf   : > { %4568 = vmatprep.mubr.msk.bf16.mxu0 %vm964_vm1, %v6865_v23 }
  0xb2   : > { %4599 = vmatmul.mubr.msk.bf16.gmra.mxu1 %vm964_vm1, %v6866_v34  ;;  %v2667_v34 = vld [vmem:[%s5006_s17 + $0x48] sm:$0xff] }
  0xb3   : > { %4602 = vmatprep.mubr.msk.bf16.mxu1 %vm964_vm1, %v2406_v51  ;;  %v6880_v51 = vld [vmem:[#allocation6_spill] sm:$0xff] }
  0xb4   : > { %v2698_v23 = vmul.f32 %v6880_v51, %v2666_v61 }
  0xb6   : > { %4569 = vmatmul.mubr.msk.bf16.gmra.mxu0 %vm964_vm1, %v6867_v62  ;;  %v2991_v62 = vld [vmem:[%s5006_s17 + $0x39] sm:$0xff] }
  0xb7   : > { %4572 = vmatprep.mubr.msk.bf16.mxu0 %vm964_vm1, %v6868_v24  ;;  %v2668_v24 = vld [vmem:[%s5006_s17 + $0x50] sm:$0xff] }
  0xba   : > { %4603 = vmatmul.mubr.msk.bf16.gmra.mxu1 %vm964_vm1, %v6869_v48  ;;  %v2992_v48 = vld [vmem:[%s5006_s17 + $0x41] sm:$0xff] }
  0xbb   : > { %4606 = vmatprep.mubr.msk.bf16.mxu1 %vm964_vm1, %v2408_v42  ;;  %v2728_v42 = vpack.c.bf16 %v2667_v34, %v2698_v23  ;;  %v2704_v23 = vmul.f32 %v5127_v9, %v2672_v44  ;;  %v2677_v44 = vld [vmem:[%s5006_s17 + $0x98] sm:$0xff] }
  0xbe   : > { %4573 = vmatmul.mubr.msk.bf16.gmra.mxu0 %vm964_vm1, %v6870_v57  ;;  %v3413_v57 = vsel %vm1013_vm0, %v5717_v0, 0 }
  0xbf   : > { %4576 = vmatprep.mubr.msk.bf16.mxu0 %vm964_vm1, %v6871_v10  ;;  %v3021_v10 = vpack.c.bf16 %v2991_v62, %v2990_v54  ;;  %v2673_v62 = vld [vmem:[%s5006_s17 + $0x78] sm:$0xff] }
  0xc2   : > { %4607 = vmatmul.mubr.msk.bf16.gmra.mxu1 %vm964_vm1, %v6872_v39 }
  0xc3   : > { %4610 = vmatprep.mubr.msk.bf16.mxu1 %vm964_vm1, %v2410_v60  ;;  %v2670_v60 = vld [vmem:[%s5006_s17 + $0x60] sm:$0xff] }
  0xc4   : > { %v2702_v0 = vmul.f32 %v5107_v63, %v2670_v60  ;;  %v2997_v63 = vld [vmem:[%s5006_s17 + $0x69] sm:$0xff] }
  0xc5   : > { %v3024_v34 = vpack.c.bf16 %v2997_v63, %v2996_v56 }
  0xc6   : > { %4577 = vmatmul.mubr.msk.bf16.gmra.mxu0 %vm964_vm1, %v6873_v28  ;;  %v6882_v28 = vpack.c.bf16 %v5082_v50, %v6881_v52  ;;  %v2999_v52 = vld [vmem:[%s5006_s17 + $0x79] sm:$0xff] }
  0xc7   : > { %4580 = vmatprep.mubr.msk.bf16.mxu0 %vm964_vm1, %v6874_v58  ;;  %v3022_v58 = vpack.c.bf16 %v2993_v33, %v2992_v48  ;;  %v2675_v33 = vld [vmem:[%s5006_s17 + $0x88] sm:$0xff] }
  0xca   : > { %4611 = vmatmul.mubr.msk.bf16.gmra.mxu1 %vm964_vm1, %v6875_v30  ;;  %v2669_v30 = vld [vmem:[%s5006_s17 + $0x58] sm:$0xff] }
  0xcb   : > { %4614 = vmatprep.mubr.msk.bf16.mxu1 %vm964_vm1, %v2412_v26  ;;  %v2700_v26 = vmul.f32 %v5068_v46, %v2668_v24 }
  0xcd   : > { %v2729_v46 = vpack.c.bf16 %v2669_v30, %v2700_v26  ;;  %v3001_v30 = vld [vmem:[%s5006_s17 + $0x89] sm:$0xff] }
  0xce   : > { %4581 = vmatmul.mubr.msk.bf16.gmra.mxu0 %vm964_vm1, %v6876_v12  ;;  %v2671_v12 = vld [vmem:[%s5006_s17 + $0x68] sm:$0xff] }
  0xcf   : > { %4584 = vmatprep.mubr.msk.bf16.mxu0 %vm964_vm1, %v6877_v36 }
  0xd2   : > { %4615 = vmatmul.mubr.msk.bf16.gmra.mxu1 %vm964_vm1, %v6878_v55  ;;  %v2730_v55 = vpack.c.bf16 %v2671_v12, %v2702_v0  ;;  %v2678_v12 = vld [vmem:[%s5006_s17 + $0xa0] sm:$0xff] }
  0xd3   : > { %4618 = vmatprep.mubr.msk.bf16.mxu1 %vm964_vm1, %v2414_v53  ;;  %v2710_v56 = vmul.f32 %v5177_v45, %v2678_v12  ;;  %v2680_v45 = vld [vmem:[%s5006_s17 + $0xb0] sm:$0xff] }
  0xd6   : > { %4585 = vmatmul.mubr.msk.bf16.gmra.mxu0 %vm964_vm1, %v5811_v14 }
  0xd7   : > { %4624 = vmatprep.mubr.msk.bf16.mxu0 %vm964_vm1, %v2726_v2 }
  0xda   : > { %4619 = vmatmul.mubr.msk.bf16.gmra.mxu1 %vm964_vm1, %v2415_v19  ;;  %v3023_v19 = vpack.c.bf16 %v2995_v18, %v2994_v15 }
  0xdb   : > { %4658 = vmatprep.mubr.msk.bf16.mxu1 %vm964_vm1, %v3020_v16 }
  0xde   : > { %v4422_v39 = vpop.f32.mrf.mxu0  ;;  %4625 = vmatmul.mubr.msk.bf16.vlgmr.msra.gmra.mxu0 %vm964_vm1, %v6882_v28 }
  0xdf   : > { %4691 = vmatpush3.bf16.msra.mxu0 %v3413_v57  ;;  %4628 = vmatprep.mubr.msk.bf16.mxu0 %vm964_vm1, %v2728_v42  ;;  %v2706_v42 = vmul.f32 %v5137_v13, %v2674_v6  ;;  %v2676_v13 = vld [vmem:[%s5006_s17 + $0x90] sm:$0xff]  ;;  %v2679_v6 = vld [vmem:[%s5006_s17 + $0xa8] sm:$0xff] }
  0xe0   : > { %v1051_v3 = vpop.f32.mrf.mxu0  ;;  %v2708_v18 = vmul.f32 %v5167_v40, %v2676_v13 }
  0xe1   : > { %v2732_v26 = vpack.c.bf16 %v2675_v33, %v2706_v42  ;;  %v3004_v42 = vld [vmem:[%s5006_s17 + $0xa1] sm:$0xff] }
  0xe2   : > { %v4456_v50 = vpop.f32.mrf.mxu1  ;;  %4659 = vmatmul.mubr.msk.bf16.vlgmr.msra.gmra.mxu1 %vm964_vm1, %v3021_v10  ;;  %v4423_v36 = vpop.f32.mrf.mxu0  ;;  %v2731_v10 = vpack.c.bf16 %v2673_v62, %v2704_v23  ;;  %v3002_v23 = vld [vmem:[%s5006_s17 + $0x91] sm:$0xff]  ;;  %v2734_v62 = vpack.c.bf16 %v2679_v6, %v2710_v56  ;;  %v3008_v6 = vld [vmem:[%s5006_s17 + $0xc1] sm:$0xff] }
  0xe3   : > { %v5847_v53 = vadd.f32 %v4456_v50, %v4422_v39  ;;  %4662 = vmatprep.mubr.msk.bf16.mxu1 %vm964_vm1, %v3022_v58  ;;  %v2998_v39 = vld [vmem:[%s5006_s17 + $0x71] sm:$0xff]  ;;  %v3000_v58 = vld [vmem:[%s5006_s17 + $0x81] sm:$0xff] }
  0xe4   : > { %v1263_v37 = vpop.f32.mrf.mxu1  ;;  %v1054_v35 = vpop.f32.mrf.mxu0 }
  0xe5   : > { %v5855_v2 = vadd.f32 %v1263_v37, %v1051_v3  ;;  %v3026_v37 = vpack.c.bf16 %v3001_v30, %v3000_v58  ;;  %v2681_v30 = vld [vmem:[%s5006_s17 + $0xb8] sm:$0xff] }
  0xe6   : > { %v4457_v61 = vpop.f32.mrf.mxu1  ;;  %v4426_v51 = vpop.f32.mrf.mxu0  ;;  %4629 = vmatmul.mubr.msk.bf16.gmra.mxu0 %vm964_vm1, %v2729_v46 }
  0xe7   : > { %v5858_v16 = vadd.f32 %v4457_v61, %v4423_v36  ;;  %4632 = vmatprep.mubr.msk.bf16.mxu0 %vm964_vm1, %v2730_v55  ;;  %v3025_v36 = vpack.c.bf16 %v2999_v52, %v2998_v39 }
  0xe8   : > { %v1266_v54 = vpop.f32.mrf.mxu1  ;;  %v1067_v48 = vpop.f32.mrf.mxu0 }
  0xe9   : > { %v5865_v24 = vadd.f32 %v1266_v54, %v1054_v35 }
  0xea   : > { %v4460_v57 = vpop.f32.mrf.mxu1  ;;  %4663 = vmatmul.mubr.msk.bf16.gmra.mxu1 %vm964_vm1, %v3023_v19  ;;  %v4427_v60 = vpop.f32.mrf.mxu0 }
  0xeb   : > { %v5869_v9 = vadd.f32 %v4460_v57, %v4426_v51  ;;  %4666 = vmatprep.mubr.msk.bf16.mxu1 %vm964_vm1, %v3024_v34  ;;  %v2733_v51 = vpack.c.bf16 %v2677_v44, %v2708_v18  ;;  %v3003_v34 = vld [vmem:[%s5006_s17 + $0x99] sm:$0xff] }
  0xec   : > { %v1279_v28 = vpop.f32.mrf.mxu1  ;;  %v1070_v3 = vpop.f32.mrf.mxu0  ;;  %v3027_v39 = vpack.c.bf16 %v3003_v34, %v3002_v23  ;;  %v3007_v44 = vld [vmem:[%s5006_s17 + $0xb9] sm:$0xff] }
  0xed   : > { %v5877_v0 = vadd.f32 %v1279_v28, %v1067_v48  ;;  %v3005_v48 = vld [vmem:[%s5006_s17 + $0xa9] sm:$0xff]  ;;  %v2686_v23 = vld [vmem:[%s5006_s17 + $0xe0] sm:$0xff] }
  0xee   : > { %v4461_v50 = vpop.f32.mrf.mxu1  ;;  %v4430_v15 = vpop.f32.mrf.mxu0  ;;  %4633 = vmatmul.mubr.msk.bf16.gmra.mxu0 %vm964_vm1, %v2731_v10  ;;  %v3028_v13 = vpack.c.bf16 %v3005_v48, %v3004_v42 }
  0xef   : > { %v5880_v46 = vadd.f32 %v4461_v50, %v4427_v60  ;;  %4636 = vmatprep.mubr.msk.bf16.mxu0 %vm964_vm1, %v2732_v26  ;;  %v2682_v60 = vld [vmem:[%s5006_s17 + $0xc0] sm:$0xff]  ;;  %v2712_v26 = vmul.f32 %v5216_v29, %v2680_v45 }
  0xf0   : > { %v1282_v55 = vpop.f32.mrf.mxu1  ;;  %v1083_v35 = vpop.f32.mrf.mxu0 }
  0xf1   : > { %v5887_v63 = vadd.f32 %v1282_v55, %v1070_v3  ;;  %v2714_v3 = vmul.f32 %v6833_v4, %v2682_v60  ;;  %v3006_v55 = vld [vmem:[%s5006_s17 + $0xb1] sm:$0xff] }
  0xf2   : > { %v4464_v61 = vpop.f32.mrf.mxu1  ;;  %4667 = vmatmul.mubr.msk.bf16.gmra.mxu1 %vm964_vm1, %v3025_v36  ;;  %v4431_v19 = vpop.f32.mrf.mxu0  ;;  %v2683_v36 = vld [vmem:[%s5006_s17 + $0xc8] sm:$0xff]  ;;  %v2684_v4 = vld [vmem:[%s5006_s17 + $0xd0] sm:$0xff]  ;;  %v2685_v60 = vld [vmem:[%s5006_s17 + $0xd8] sm:$0xff] }
  0xf3   : > { %v5891_v40 = vadd.f32 %v4464_v61, %v4430_v15  ;;  %4670 = vmatprep.mubr.msk.bf16.mxu1 %vm964_vm1, %v3026_v37  ;;  %v2735_v37 = vpack.c.bf16 %v2681_v30, %v2712_v26  ;;  %v3009_v61 = vld [vmem:[%s5006_s17 + $0xc9] sm:$0xff]  ;;  %v2716_v42 = vmul.f32 %v6838_v17, %v2684_v4 }
  0xf4   : > { %v1295_v54 = vpop.f32.mrf.mxu1  ;;  %v1086_v57 = vpop.f32.mrf.mxu0  ;;  %v3030_v48 = vpack.c.bf16 %v3009_v61, %v3008_v6  ;;  %v2687_v26 = vld [vmem:[%s5006_s17 + $0xe8] sm:$0xff] }
  0xf5   : > { %v5899_v33 = vadd.f32 %v1295_v54, %v1083_v35  ;;  %v2736_v35 = vpack.c.bf16 %v2683_v36, %v2714_v3  ;;  %v3029_v54 = vpack.c.bf16 %v3007_v44, %v3006_v55  ;;  %v2737_v30 = vpack.c.bf16 %v2685_v60, %v2716_v42  ;;  %v3010_v3 = vld [vmem:[%s5006_s17 + $0xd1] sm:$0xff] }
  0xf6   : > { %v4465_v10 = vpop.f32.mrf.mxu1  ;;  %v4434_v28 = vpop.f32.mrf.mxu0  ;;  %4637 = vmatmul.mubr.msk.bf16.gmra.mxu0 %vm964_vm1, %v2733_v51 }
  0xf7   : > { %v5902_v52 = vadd.f32 %v4465_v10, %v4431_v19  ;;  %4640 = vmatprep.mubr.msk.bf16.mxu0 %vm964_vm1, %v2734_v62  ;;  %v2718_v10 = vmul.f32 %v6840_v7, %v2686_v23  ;;  %v2688_v7 = vld [vmem:[%s5006_s17 + $0xf0] sm:$0xff] }
  0xf8   : > { %v1298_v58 = vpop.f32.mrf.mxu1  ;;  %v1099_v50 = vpop.f32.mrf.mxu0  ;;  %v2720_v61 = vmul.f32 %v6845_v25, %v2688_v7  ;;  %v3014_v25 = vld [vmem:[%s5006_s17 + $0xf1] sm:$0xff] }
  0xf9   : > { %v5909_v12 = vadd.f32 %v1298_v58, %v1086_v57 }
  0xfa   : > { %v4468_v15 = vpop.f32.mrf.mxu1  ;;  %4671 = vmatmul.mubr.msk.bf16.gmra.mxu1 %vm964_vm1, %v3027_v39  ;;  %v4435_v18 = vpop.f32.mrf.mxu0 }
  0xfb   : > { %v5913_v29 = vadd.f32 %v4468_v15, %v4434_v28  ;;  %4674 = vmatprep.mubr.msk.bf16.mxu1 %vm964_vm1, %v3028_v13  ;;  %v2738_v15 = vpack.c.bf16 %v2687_v26, %v2718_v10  ;;  %v3015_v10 = vld [vmem:[%s5006_s17 + $0xf9] sm:$0xff] }
  0xfc   : > { %v1311_v56 = vpop.f32.mrf.mxu1  ;;  %v1102_v51 = vpop.f32.mrf.mxu0 }
  0xfd   : > { %v5921_v19 = vadd.f32 %v1311_v56, %v1099_v50  ;;  %v3011_v50 = vld [vmem:[%s5006_s17 + $0xd9] sm:$0xff] }
  0xfe   : > { %v4469_v34 = vpop.f32.mrf.mxu1  ;;  %v4438_v45 = vpop.f32.mrf.mxu0  ;;  %4641 = vmatmul.mubr.msk.bf16.gmra.mxu0 %vm964_vm1, %v2735_v37  ;;  %v3013_v37 = vld [vmem:[%s5006_s17 + $0xe9] sm:$0xff] }
  0xff   : > { %v5924_v62 = vadd.f32 %v4469_v34, %v4435_v18  ;;  %4644 = vmatprep.mubr.msk.bf16.mxu0 %vm964_vm1, %v2736_v35  ;;  %v3012_v18 = vld [vmem:[%s5006_s17 + $0xe1] sm:$0xff]  ;;  %v3031_v35 = vpack.c.bf16 %v3011_v50, %v3010_v3  ;;  %v2689_v34 = vld [vmem:[%s5006_s17 + $0xf8] sm:$0xff]  ;;  %v3033_v3 = vpack.c.bf16 %v3015_v10, %v3014_v25 }
 0x100   : > { %v1314_v57 = vpop.f32.mrf.mxu1  ;;  %v1115_v28 = vpop.f32.mrf.mxu0  ;;  %v2739_v60 = vpack.c.bf16 %v2689_v34, %v2720_v61  ;;  %v3019_v34 = vld [vmem:[%s5006_s17 + $0x119] sm:$0xff] }
 0x101   : > { %v5931_v39 = vadd.f32 %v1314_v57, %v1102_v51  ;;  %v3032_v51 = vpack.c.bf16 %v3013_v37, %v3012_v18 }
 0x102   : > { %v4472_v13 = vpop.f32.mrf.mxu1  ;;  %4675 = vmatmul.mubr.msk.bf16.gmra.mxu1 %vm964_vm1, %v3029_v54  ;;  %v4439_v17 = vpop.f32.mrf.mxu0  ;;  %v2722_v54 = vmul.f32 %v6847_v47, %v5687_v38  ;;  %v3283_v38 = vld [vmem:[%s5006_s17 + $0x2a] sm:$0xff] }
 0x103   : > { %v5935_v58 = vadd.f32 %v4472_v13, %v4438_v45  ;;  %4678 = vmatprep.mubr.msk.bf16.mxu1 %vm964_vm1, %v3030_v48  ;;  %v2692_v13 = vld [vmem:[%s5006_s17 + $0x110] sm:$0xff]  ;;  %v3315_v18 = vmul.f32 %v6853_v49, %v3283_v38 }
 0x104   : > { %v1327_v36 = vpop.f32.mrf.mxu1  ;;  %v5945_v44 = vpop.f32.mrf.mxu0  ;;  %v2740_v26 = vpack.c.bf16 %v5699_v59, %v2722_v54  ;;  %v2693_v59 = vld [vmem:[%s5006_s17 + $0x118] sm:$0xff] }
 0x105   : > { %v5943_v55 = vadd.f32 %v1327_v36, %v1115_v28 }
 0x106   : > { %v4473_v56 = vpop.f32.mrf.mxu1  ;;  %v4442_v6 = vpop.f32.mrf.mxu0  ;;  %4645 = vmatmul.mubr.msk.bf16.gmra.mxu0 %vm964_vm1, %v2737_v30 }
 0x107   : > { %v5947_v4 = vadd.f32 %v4473_v56, %v4439_v17  ;;  %4648 = vmatprep.mubr.msk.bf16.mxu0 %vm964_vm1, %v2738_v15  ;;  %v2724_v15 = vmul.f32 %v6851_v27, %v2692_v13  ;;  %v3282_v56 = vld [vmem:[%s5006_s17 + $0x22] sm:$0xff]  ;;  %v3018_v27 = vld [vmem:[%s5006_s17 + $0x111] sm:$0xff] }
 0x108   : > { %v5951_v23 = vpop.f32.mrf.mxu1  ;;  %v1131_v45 = vpop.f32.mrf.mxu0  ;;  %v3035_v25 = vpack.c.bf16 %v3019_v34, %v3018_v27 }
 0x10a   : > { %v4476_v42 = vpop.f32.mrf.mxu1  ;;  %4679 = vmatmul.mubr.msk.bf16.gmra.mxu1 %vm964_vm1, %v3031_v35  ;;  %v4443_v57 = vpop.f32.mrf.mxu0 }
 0x10b   : > { %v5958_v48 = vadd.f32 %v4476_v42, %v4442_v6  ;;  %4682 = vmatprep.mubr.msk.bf16.mxu1 %vm964_vm1, %v3032_v51  ;;  %v2741_v51 = vpack.c.bf16 %v2693_v59, %v2724_v15  ;;  %v6883_v59 = vld [vmem:[#allocation17_spill] sm:$0xff] }
 0x10c   : > { %v1343_v28 = vpop.f32.mrf.mxu1  ;;  %v5967_v47 = vpop.f32.mrf.mxu0 }
 0x10d   : > { %v5965_v17 = vadd.f32 %v1343_v28, %v1131_v45  ;;  %v3346_v45 = vpack.c.bf16 %v3315_v18, %v3282_v56 }
 0x10e   : > { %v4477_v30 = vpop.f32.mrf.mxu1  ;;  %v4446_v36 = vpop.f32.mrf.mxu0  ;;  %4649 = vmatmul.mubr.msk.bf16.gmra.mxu0 %vm964_vm1, %v2739_v60 }
 0x10f   : > { %v5970_v50 = vadd.f32 %v4477_v30, %v4443_v57  ;;  %4652 = vmatprep.mubr.msk.bf16.mxu0 %vm964_vm1, %v2740_v26  ;;  %v3287_v57 = vld [vmem:[%s5006_s17 + $0x4a] sm:$0xff]  ;;  %v3286_v30 = vld [vmem:[%s5006_s17 + $0x42] sm:$0xff] }
 0x110   : > { %v5974_v7 = vpop.f32.mrf.mxu1  ;;  %v1147_v37 = vpop.f32.mrf.mxu0  ;;  %v3319_v13 = vmul.f32 %v6855_v1, %v3287_v57  ;;  %v3291_v1 = vld [vmem:[%s5006_s17 + $0x6a] sm:$0xff] }
 0x112   : > { %v4480_v35 = vpop.f32.mrf.mxu1  ;;  %4683 = vmatmul.mubr.msk.bf16.gmra.mxu1 %vm964_vm1, %v3033_v3  ;;  %v4447_v61 = vpop.f32.mrf.mxu0  ;;  %v3348_v56 = vpack.c.bf16 %v3319_v13, %v3286_v30  ;;  %v3290_v13 = vld [vmem:[%s5006_s17 + $0x62] sm:$0xff] }
 0x113   : > { %v5981_v6 = vadd.f32 %v4480_v35, %v4446_v36  ;;  %4686 = vmatprep.mubr.msk.bf16.mxu1 %vm964_vm1, %v5811_v14  ;;  %v3284_v14 = vld [vmem:[%s5006_s17 + $0x32] sm:$0xff]  ;;  %v3289_v35 = vld [vmem:[%s5006_s17 + $0x5a] sm:$0xff] }
 0x114   : > { %v1359_v54 = vpop.f32.mrf.mxu1  ;;  %v5989_v49 = vpop.f32.mrf.mxu0  ;;  %v3347_v18 = vpack.c.bf16 %v6883_v59, %v3284_v14 }
 0x115   : > { %v5987_v42 = vadd.f32 %v1359_v54, %v1147_v37 }
 0x116   : > { %v4481_v60 = vpop.f32.mrf.mxu1  ;;  %v4450_v28 = vpop.f32.mrf.mxu0  ;;  %4653 = vmatmul.mubr.msk.bf16.gmra.mxu0 %vm964_vm1, %v2741_v51 }
 0x117   : > { %v5992_v10 = vadd.f32 %v4481_v60, %v4447_v61  ;;  %4692 = vmatprep.mubr.msk.bf16.mxu0 %vm964_vm1, %v3346_v45  ;;  %v3321_v45 = vmul.f32 %v5252_v8, %v3289_v35 }
 0x118   : > { %v5995_v26 = vpop.f32.mrf.mxu1  ;;  %v1163_v38 = vpop.f32.mrf.mxu0 }
 0x11a   : > { %v4484_v3 = vpop.f32.mrf.mxu1  ;;  %4687 = vmatmul.mubr.msk.bf16.gmra.mxu1 %vm964_vm1, %v3035_v25  ;;  %v4451_v15 = vpop.f32.mrf.mxu0  ;;  %v3288_v25 = vld [vmem:[%s5006_s17 + $0x52] sm:$0xff] }
 0x11b   : > { %v6002_v36 = vadd.f32 %v4484_v3, %v4450_v28  ;;  %v3323_v28 = vmul.f32 %v5310_v11, %v3291_v1  ;;  %v3349_v8 = vpack.c.bf16 %v3321_v45, %v3288_v25  ;;  %v3295_v11 = vld [vmem:[%s5006_s17 + $0x8a] sm:$0xff] }
 0x11c   : > { %v1375_v37 = vpop.f32.mrf.mxu1  ;;  %v6008_v51 = vpop.f32.mrf.mxu0  ;;  %v6884_v45 = vld [vmem:[#allocation26_spill] sm:$0xff] }
 0x11d   : > { %v6006_v61 = vadd.f32 %v1375_v37, %v1163_v38  ;;  %v3293_v37 = vld [vmem:[%s5006_s17 + $0x7a] sm:$0xff] }
 0x11e   : > { %v4485_v27 = vpop.f32.mrf.mxu1  ;;  %v4490_v54 = vpop.f32.mrf.mxu0  ;;  %4693 = vmatmul.mubr.msk.bf16.vlgmr.msra.gmra.mxu0 %vm964_vm1, %v3347_v18  ;;  %v3350_v18 = vpack.c.bf16 %v3323_v28, %v3290_v13  ;;  %v3292_v28 = vld [vmem:[%s5006_s17 + $0x72] sm:$0xff]  ;;  %v3294_v13 = vld [vmem:[%s5006_s17 + $0x82] sm:$0xff] }
 0x11f   : > { %v6011_v34 = vadd.f32 %v4485_v27, %v4451_v15  ;;  %v1686_v57 = vadd.f32 %v4490_v54, %v5847_v53  ;;  %4696 = vmatprep.mubr.msk.bf16.mxu0 %vm964_vm1, %v3348_v56 }
 0x120   : > { %v6016_v60 = vpop.f32.mrf.mxu1  ;;  %v1557_v14 = vpop.f32.mrf.mxu0 }
 0x121   : > { %v1684_v38 = vadd.f32 %v1557_v14, %v5855_v2 }
 0x122   : > { %v4524_v30 = vpop.f32.mrf.mxu1  ;;  %v4491_v15 = vpop.f32.mrf.mxu0 }
 0x123   : > { %v6023_v3 = vadd.f32 %v4524_v30, %v1686_v57  ;;  %v1687_v59 = vadd.f32 %v4491_v15, %v5858_v16  ;;  %v3325_v16 = vmul.f32 %v6884_v45, %v3293_v37 }
 0x124   : > { %v1883_v53 = vpop.f32.mrf.mxu1  ;;  %v1560_v35 = vpop.f32.mrf.mxu0 }
 0x125   : > { %v6027_v56 = vadd.f32 %v1883_v53, %v1684_v38  ;;  %v6031_v1 = vadd.f32 %v1560_v35, %v5865_v24  ;;  %v3327_v24 = vmul.f32 %v5328_v20, %v3295_v11  ;;  %v3297_v35 = vld [vmem:[%s5006_s17 + $0x9a] sm:$0xff]  ;;  %v3299_v20 = vld [vmem:[%s5006_s17 + $0xaa] sm:$0xff] }
 0x126   : > { %v4525_v2 = vpop.f32.mrf.mxu1  ;;  %v4494_v54 = vpop.f32.mrf.mxu0  ;;  %4697 = vmatmul.mubr.msk.bf16.gmra.mxu0 %vm964_vm1, %v3349_v8 }
 0x127   : > { %v6033_v27 = vadd.f32 %v4525_v2, %v1687_v59  ;;  %v1690_v57 = vadd.f32 %v4494_v54, %v5869_v9  ;;  %4700 = vmatprep.mubr.msk.bf16.mxu0 %vm964_vm1, %v3350_v18  ;;  %v3351_v59 = vpack.c.bf16 %v3325_v16, %v3292_v28  ;;  %v3352_v37 = vpack.c.bf16 %v3327_v24, %v3294_v13  ;;  %v6885_v16 = vld [vmem:[#allocation30_spill] sm:$0xff] }
 0x128   : > { %v6038_v25 = vpop.f32.mrf.mxu1  ;;  %v1573_v14 = vpop.f32.mrf.mxu0 }
 0x129   : > { %v1688_v38 = vadd.f32 %v1573_v14, %v5877_v0  ;;  %v3331_v14 = vmul.f32 %v5343_v5, %v3299_v20  ;;  %v3303_v20 = vld [vmem:[%s5006_s17 + $0xca] sm:$0xff] }
 0x12a   : > { %v4528_v30 = vpop.f32.mrf.mxu1  ;;  %v4495_v8 = vpop.f32.mrf.mxu0 }
 0x12b   : > { %v6045_v15 = vadd.f32 %v4528_v30, %v1690_v57  ;;  %v1691_v53 = vadd.f32 %v4495_v8, %v5880_v46  ;;  %v3329_v46 = vmul.f32 %v6885_v16, %v3297_v35  ;;  %v4824_v57 = vld [vmem:[%s6712_s3 + $0x38] sm:$0xff]  }
 0x12c   : > { %v1899_v9 = vpop.f32.mrf.mxu1  ;;  %v1576_v2 = vpop.f32.mrf.mxu0  ;;  %4724 = vmatprep.subr.bf16.mxu1 %v4824_v57 }
 0x12d   : > { %v6049_v18 = vadd.f32 %v1899_v9, %v1688_v38  ;;  %v6053_v11 = vadd.f32 %v1576_v2, %v5887_v63  ;;  %v3296_v63 = vld [vmem:[%s5006_s17 + $0x92] sm:$0xff]  ;;  %v3298_v38 = vld [vmem:[%s5006_s17 + $0xa2] sm:$0xff]  ;;  %4725 = vmatpush3.bf16.msra.mxu1 %v4824_v57  ;;  %v3301_v2 = vld [vmem:[%s5006_s17 + $0xba] sm:$0xff] }
 0x12e   : > { %v4529_v0 = vpop.f32.mrf.mxu1  ;;  %v4498_v45 = vpop.f32.mrf.mxu0  ;;  %4701 = vmatmul.mubr.msk.bf16.gmra.mxu0 %vm964_vm1, %v3351_v59 }
 0x12f   : > { %v6055_v54 = vadd.f32 %v4529_v0, %v1691_v53  ;;  %v1694_v28 = vadd.f32 %v4498_v45, %v5891_v40  ;;  %4704 = vmatprep.mubr.msk.bf16.mxu0 %vm964_vm1, %v3352_v37  ;;  %v3353_v40 = vpack.c.bf16 %v3329_v46, %v3296_v63  ;;  %v3354_v37 = vpack.c.bf16 %v3331_v14, %v3298_v38  ;;  %v6886_v46 = vld [vmem:[#allocation35_spill] sm:$0xff] }
 0x130   : > { %v6063_v24 = vpop.f32.mrf.mxu1  ;;  %v1589_v13 = vpop.f32.mrf.mxu0 }
 0x131   : > { %v1692_v30 = vadd.f32 %v1589_v13, %v5899_v33  ;;  %v3335_v13 = vmul.f32 %v5381_v22, %v3303_v20  ;;  %v3307_v20 = vld [vmem:[%s5006_s17 + $0xea] sm:$0xff] }
 0x132   : > { %v4532_v8 = vpop.f32.mrf.mxu1  ;;  %v4499_v53 = vpop.f32.mrf.mxu0 }
 0x133   : > { %v6070_v59 = vadd.f32 %v4532_v8, %v1694_v28  ;;  %v1695_v9 = vadd.f32 %v4499_v53, %v5902_v52  ;;  %v3333_v52 = vmul.f32 %v6886_v46, %v3301_v2  ;;  %v4825_v28 = vld [vmem:[%s6712_s3 + $0x30] sm:$0xff]  }
 0x134   : > { %v1915_v35 = vpop.f32.mrf.mxu1  ;;  %v1592_v5 = vpop.f32.mrf.mxu0  ;;  %4726 = vmatprep.subr.bf16.mxu1 %v4825_v28 }
 0x135   : > { %v6074_v0 = vadd.f32 %v1915_v35, %v1692_v30  ;;  %v6078_v45 = vadd.f32 %v1592_v5, %v5909_v12  ;;  %v3300_v12 = vld [vmem:[%s5006_s17 + $0xb2] sm:$0xff]  ;;  %v3302_v30 = vld [vmem:[%s5006_s17 + $0xc2] sm:$0xff]  ;;  %4727 = vmatpush3.bf16.msra.mxu1 %v4825_v28  ;;  %v3305_v5 = vld [vmem:[%s5006_s17 + $0xda] sm:$0xff] }
 0x136   : > { %v4533_v33 = vpop.f32.mrf.mxu1  ;;  %v4502_v57 = vpop.f32.mrf.mxu0  ;;  %4705 = vmatmul.mubr.msk.bf16.gmra.mxu0 %vm964_vm1, %v3353_v40 }
 0x137   : > { %v6080_v16 = vadd.f32 %v4533_v33, %v1695_v9  ;;  %v1698_v63 = vadd.f32 %v4502_v57, %v5913_v29  ;;  %4708 = vmatprep.mubr.msk.bf16.mxu0 %vm964_vm1, %v3354_v37  ;;  %v3355_v29 = vpack.c.bf16 %v3333_v52, %v3300_v12  ;;  %v3356_v37 = vpack.c.bf16 %v3335_v13, %v3302_v30  ;;  %v6887_v52 = vld [vmem:[#allocation41_spill] sm:$0xff] }
 0x138   : > { %v6088_v14 = vpop.f32.mrf.mxu1  ;;  %v1605_v38 = vpop.f32.mrf.mxu0 }
 0x139   : > { %v1696_v8 = vadd.f32 %v1605_v38, %v5921_v19  ;;  %v3339_v38 = vmul.f32 %v6836_v43, %v3307_v20  ;;  %v3309_v43 = vld [vmem:[%s5006_s17 + $0xfa] sm:$0xff] }
 0x13a   : > { %v4536_v53 = vpop.f32.mrf.mxu1  ;;  %v4503_v9 = vpop.f32.mrf.mxu0 }
 0x13b   : > { %v6095_v40 = vadd.f32 %v4536_v53, %v1698_v63  ;;  %v1699_v35 = vadd.f32 %v4503_v9, %v5924_v62  ;;  %v3337_v62 = vmul.f32 %v6887_v52, %v3305_v5  ;;  %v4826_v63 = vld [vmem:[%s6712_s3 + $0x28] sm:$0xff]  }
 0x13c   : > { %v1931_v2 = vpop.f32.mrf.mxu1  ;;  %v1608_v22 = vpop.f32.mrf.mxu0  ;;  %4728 = vmatprep.subr.bf16.mxu1 %v4826_v63 }
 0x13d   : > { %v6099_v33 = vadd.f32 %v1931_v2, %v1696_v8  ;;  %v6103_v57 = vadd.f32 %v1608_v22, %v5931_v39  ;;  %v3304_v39 = vld [vmem:[%s5006_s17 + $0xd2] sm:$0xff]  ;;  %v3306_v8 = vld [vmem:[%s5006_s17 + $0xe2] sm:$0xff]  ;;  %4729 = vmatpush3.bf16.msra.mxu1 %v4826_v63 }
 0x13e   : > { %v4537_v19 = vpop.f32.mrf.mxu1  ;;  %v4506_v28 = vpop.f32.mrf.mxu0  ;;  %4709 = vmatmul.mubr.msk.bf16.gmra.mxu0 %vm964_vm1, %v3355_v29  ;;  %v3357_v2 = vpack.c.bf16 %v3337_v62, %v3304_v39  ;;  %v3358_v22 = vpack.c.bf16 %v3339_v38, %v3306_v8  ;;  %v6888_v62 = vld [vmem:[#allocation45_spill] sm:$0xff]  ;;  %v3308_v39 = vld [vmem:[%s5006_s17 + $0xf2] sm:$0xff]  ;;  %v3343_v38 = vmul.f32 %v6843_v41, %v5798_v32 }
 0x13f   : > { %v6105_v46 = vadd.f32 %v4537_v19, %v1699_v35  ;;  %v1702_v12 = vadd.f32 %v4506_v28, %v5935_v58  ;;  %4712 = vmatprep.mubr.msk.bf16.mxu0 %vm964_vm1, %v3356_v37  ;;  %v1331_v58 = vadd.f32 %v5951_v23, %v5945_v44  ;;  %v4827_v44 = vld [vmem:[%s6712_s3 + $0x20] sm:$0xff]  }
 0x140   : > { %v6113_v13 = vpop.f32.mrf.mxu1  ;;  %v1621_v30 = vpop.f32.mrf.mxu0  ;;  %4730 = vmatprep.subr.bf16.mxu1 %v4827_v44  ;;  %v3360_v41 = vpack.c.bf16 %v3343_v38, %v5815_v21  ;;  %v3313_v32 = vld [vmem:[%s5006_s17 + $0x11a] sm:$0xff]  ;;  %v1363_v38 = vadd.f32 %v5995_v26, %v5989_v49 }
 0x141   : > { %v1700_v53 = vadd.f32 %v1621_v30, %v5943_v55  ;;  %4731 = vmatpush3.bf16.msra.mxu1 %v4827_v44 }
 0x142   : > { %v4540_v9 = vpop.f32.mrf.mxu1  ;;  %v4507_v35 = vpop.f32.mrf.mxu0 }
 0x143   : > { %v6120_v29 = vadd.f32 %v4540_v9, %v1702_v12  ;;  %v1703_v37 = vadd.f32 %v4507_v35, %v5947_v4  ;;  %v3341_v12 = vmul.f32 %v6888_v62, %v3309_v43 }
 0x144   : > { %v1947_v5 = vpop.f32.mrf.mxu1  ;;  %v1624_v19 = vpop.f32.mrf.mxu0 }
 0x145   : > { %v6126_v20 = vadd.f32 %v1947_v5, %v1700_v53  ;;  %v1701_v28 = vadd.f32 %v1624_v19, %v1331_v58  ;;  %v1347_v58 = vadd.f32 %v5974_v7, %v5967_v47  ;;  %v4828_v47 = vld [vmem:[%s6712_s3 + $0x18] sm:$0xff]  }
 0x146   : > { %v4541_v55 = vpop.f32.mrf.mxu1  ;;  %v4510_v63 = vpop.f32.mrf.mxu0  ;;  %4713 = vmatmul.mubr.msk.bf16.gmra.mxu0 %vm964_vm1, %v3357_v2  ;;  %v3312_v7 = vld [vmem:[%s5006_s17 + $0x112] sm:$0xff]  ;;  %4732 = vmatprep.subr.bf16.mxu1 %v4828_v47 }
 0x147   : > { %v6128_v52 = vadd.f32 %v4541_v55, %v1703_v37  ;;  %v1706_v4 = vadd.f32 %v4510_v63, %v5958_v48  ;;  %4716 = vmatprep.mubr.msk.bf16.mxu0 %vm964_vm1, %v3358_v22  ;;  %v3359_v48 = vpack.c.bf16 %v3341_v12, %v3308_v39  ;;  %v3345_v63 = vmul.f32 %v6849_v31, %v3313_v32 }
 0x148   : > { %v1950_v23 = vpop.f32.mrf.mxu1  ;;  %v1637_v8 = vpop.f32.mrf.mxu0  ;;  %4733 = vmatpush3.bf16.msra.mxu1 %v4828_v47 }
 0x149   : > { %v6140_v30 = vadd.f32 %v1950_v23, %v1701_v28  ;;  %v1704_v53 = vadd.f32 %v1637_v8, %v5965_v17  ;;  %v3361_v39 = vpack.c.bf16 %v3345_v63, %v3312_v7 }
 0x14a   : > { %v4544_v9 = vpop.f32.mrf.mxu1  ;;  %v4511_v2 = vpop.f32.mrf.mxu0 }
 0x14b   : > { %v6143_v35 = vadd.f32 %v4544_v9, %v1706_v4  ;;  %v1707_v37 = vadd.f32 %v4511_v2, %v5970_v50 }
 0x14c   : > { %v1963_v5 = vpop.f32.mrf.mxu1  ;;  %v1640_v43 = vpop.f32.mrf.mxu0 }
 0x14d   : > { %v6150_v22 = vadd.f32 %v1963_v5, %v1704_v53  ;;  %v1705_v17 = vadd.f32 %v1640_v43, %v1347_v58 }
 0x14e   : > { %v4545_v19 = vpop.f32.mrf.mxu1  ;;  %v4514_v55 = vpop.f32.mrf.mxu0  ;;  %4717 = vmatmul.mubr.msk.bf16.gmra.mxu0 %vm964_vm1, %v3359_v48 }
 0x14f   : > { %v6152_v28 = vadd.f32 %v4545_v19, %v1707_v37  ;;  %v1710_v50 = vadd.f32 %v4514_v55, %v5981_v6  ;;  %4720 = vmatprep.mubr.msk.bf16.mxu0 %vm964_vm1, %v3360_v41  ;;  %v4829_v37 = vld [vmem:[%s6712_s3 + $0x10] sm:$0xff]   ;;  %v1379_v19 = vadd.f32 %v6016_v60, %v6008_v51 }
 0x150   : > { %v1966_v21 = vpop.f32.mrf.mxu1  ;;  %v1653_v12 = vpop.f32.mrf.mxu0  ;;  %4734 = vmatprep.subr.bf16.mxu1 %v4829_v37 }
 0x151   : > { %v6162_v62 = vadd.f32 %v1966_v21, %v1705_v17  ;;  %v1708_v44 = vadd.f32 %v1653_v12, %v5987_v42  ;;  %4735 = vmatpush3.bf16.msra.mxu1 %v4829_v37 }
 0x152   : > { %v4548_v4 = vpop.f32.mrf.mxu1  ;;  %v4515_v31 = vpop.f32.mrf.mxu0 }
 0x153   : > { %v6165_v23 = vadd.f32 %v4548_v4, %v1710_v50  ;;  %v1711_v6 = vadd.f32 %v4515_v31, %v5992_v10 }
 0x154   : > { %v1979_v8 = vpop.f32.mrf.mxu1  ;;  %v1656_v9 = vpop.f32.mrf.mxu0 }
 0x155   : > { %v6170_v53 = vadd.f32 %v1979_v8, %v1708_v44  ;;  %v1709_v2 = vadd.f32 %v1656_v9, %v1363_v38 }
 0x156   : > { %v4549_v48 = vpop.f32.mrf.mxu1  ;;  %v4518_v42 = vpop.f32.mrf.mxu0  ;;  %4721 = vmatmul.mubr.msk.bf16.gmra.mxu0 %vm964_vm1, %v3361_v39 }
 0x157   : > { %v6172_v58 = vadd.f32 %v4549_v48, %v1711_v6  ;;  %v1714_v5 = vadd.f32 %v4518_v42, %v6002_v36  ;;  %v2011_v6 = vadd.f32 %v6038_v25, %v6031_v1  ;;  %v4831_v1 = vld [vmem:[%s6712_s3] sm:$0xff]  }
 0x158   : > { %v1982_v49 = vpop.f32.mrf.mxu1  ;;  %v1669_v10 = vpop.f32.mrf.mxu0 }
 0x159   : > { %v6179_v26 = vadd.f32 %v1982_v49, %v1709_v2  ;;  %v1712_v41 = vadd.f32 %v1669_v10, %v6006_v61  ;;  %v4830_v61 = vld [vmem:[%s6712_s3 + $0x8] sm:$0xff]  }
 0x15a   : > { %v4552_v32 = vpop.f32.mrf.mxu1  ;;  %v4519_v17 = vpop.f32.mrf.mxu0  ;;  %4736 = vmatprep.subr.bf16.mxu1 %v4830_v61 }
 0x15b   : > { %v6182_v43 = vadd.f32 %v4552_v32, %v1714_v5  ;;  %v1715_v55 = vadd.f32 %v4519_v17, %v6011_v34  ;;  %4737 = vmatpush3.bf16.msra.mxu1 %v4830_v61  ;;  %v2015_v32 = vadd.f32 %v6063_v24, %v6053_v11 }
 0x15c   : > { %v1995_v63 = vpop.f32.mrf.mxu1  ;;  %v1672_v36 = vpop.f32.mrf.mxu0  ;;  %4738 = vmatprep.subr.bf16.mxu1 %v4831_v1 }
 0x15d   : > { %v6187_v47 = vadd.f32 %v1995_v63, %v1712_v41  ;;  %v1713_v50 = vadd.f32 %v1672_v36, %v1379_v19 }
 0x15e   : > { %v4553_v21 = vpop.f32.mrf.mxu1  ;;  %v4558_v12 = vpop.f32.mrf.mxu0 }
 0x15f   : > { %v6189_v7 = vadd.f32 %v4553_v21, %v1715_v55  ;;  %v2306_v44 = vadd.f32 %v4558_v12, %v6023_v3  ;;  %4739 = vmatpush3.bf16.msra.mxu1 %v4831_v1 }
 0x160   : > { %v1998_v4 = vpop.f32.mrf.mxu1  ;;  %v2177_v51 = vpop.f32.mrf.mxu0 }
 0x161   : > { %v6195_v31 = vadd.f32 %v1998_v4, %v1713_v50  ;;  %v2304_v34 = vadd.f32 %v2177_v51, %v6027_v56 }
 0x162   : > { %v4592_v60 = vpop.f32.mrf.mxu1  ;;  %v4559_v38 = vpop.f32.mrf.mxu0 }
 0x163   : > { %v6198_v39 = vadd.f32 %v4592_v60, %v2306_v44  ;;  %v6203_v8 = vadd.f32 %v4559_v38, %v6033_v27  ;;  %v2019_v44 = vadd.f32 %v6088_v14, %v6078_v45 }
 0x164   : > { %v2503_v9 = vpop.f32.mrf.mxu1  ;;  %v2180_v2 = vpop.f32.mrf.mxu0 }
 0x165   : > { %v6205_v3 = vadd.f32 %v2503_v9, %v2304_v34  ;;  %v6207_v48 = vadd.f32 %v2180_v2, %v2011_v6 }
 0x166   : > { %v6209_v42 = vpop.f32.mrf.mxu1  ;;  %v4562_v56 = vpop.f32.mrf.mxu0 }
 0x167   : > { %v2310_v37 = vadd.f32 %v4562_v56, %v6045_v15 }
 0x168   : > { %v6212_v5 = vpop.f32.mrf.mxu1  ;;  %v2193_v49 = vpop.f32.mrf.mxu0 }
 0x169   : > { %v2308_v27 = vadd.f32 %v2193_v49, %v6049_v18 }
 0x16a   : > { %v4596_v25 = vpop.f32.mrf.mxu1  ;;  %v4563_v41 = vpop.f32.mrf.mxu0 }
 0x16b   : > { %v6218_v10 = vadd.f32 %v4596_v25, %v2310_v37  ;;  %v6223_v17 = vadd.f32 %v4563_v41, %v6055_v54  ;;  %v2023_v37 = vadd.f32 %v6113_v13, %v6103_v57 }
 0x16c   : > { %v2519_v15 = vpop.f32.mrf.mxu1  ;;  %v2196_v55 = vpop.f32.mrf.mxu0 }
 0x16d   : > { %v6225_v19 = vadd.f32 %v2519_v15, %v2308_v27  ;;  %v6227_v63 = vadd.f32 %v2196_v55, %v2015_v32 }
 0x16e   : > { %v6229_v36 = vpop.f32.mrf.mxu1  ;;  %v4566_v18 = vpop.f32.mrf.mxu0 }
 0x16f   : > { %v2314_v50 = vadd.f32 %v4566_v18, %v6070_v59 }
 0x170   : > { %v6232_v21 = vpop.f32.mrf.mxu1  ;;  %v2209_v12 = vpop.f32.mrf.mxu0 }
 0x171   : > { %v2312_v11 = vadd.f32 %v2209_v12, %v6074_v0 }
 0x172   : > { %v4600_v24 = vpop.f32.mrf.mxu1  ;;  %v4567_v61 = vpop.f32.mrf.mxu0 }
 0x173   : > { %v6235_v54 = vadd.f32 %v4600_v24, %v2314_v50  ;;  %v6240_v4 = vadd.f32 %v4567_v61, %v6080_v16 }
 0x174   : > { %v2535_v51 = vpop.f32.mrf.mxu1  ;;  %v2212_v60 = vpop.f32.mrf.mxu0 }
 0x175   : > { %v6242_v34 = vadd.f32 %v2535_v51, %v2312_v11  ;;  %v6244_v59 = vadd.f32 %v2212_v60, %v2019_v44 }
 0x176   : > { %v6246_v38 = vpop.f32.mrf.mxu1  ;;  %v4570_v6 = vpop.f32.mrf.mxu0 }
 0x177   : > { %v2318_v0 = vadd.f32 %v4570_v6, %v6095_v40 }
 0x178   : > { %v6249_v9 = vpop.f32.mrf.mxu1  ;;  %v2225_v2 = vpop.f32.mrf.mxu0 }
 0x179   : > { %v2316_v56 = vadd.f32 %v2225_v2, %v6099_v33 }
 0x17a   : > { %v4604_v45 = vpop.f32.mrf.mxu1  ;;  %v4571_v16 = vpop.f32.mrf.mxu0 }
 0x17b   : > { %v6252_v14 = vadd.f32 %v4604_v45, %v2318_v0  ;;  %v6257_v49 = vadd.f32 %v4571_v16, %v6105_v46 }
 0x17c   : > { %v2551_v1 = vpop.f32.mrf.mxu1  ;;  %v2228_v25 = vpop.f32.mrf.mxu0 }
 0x17d   : > { %v6259_v27 = vadd.f32 %v2551_v1, %v2316_v56  ;;  %v6261_v40 = vadd.f32 %v2228_v25, %v2023_v37 }
 0x17e   : > { %v6263_v41 = vpop.f32.mrf.mxu1  ;;  %v4574_v32 = vpop.f32.mrf.mxu0 }
 0x17f   : > { %v2322_v33 = vadd.f32 %v4574_v32, %v6120_v29 }
 0x180   : > { %v6266_v15 = vpop.f32.mrf.mxu1  ;;  %v2241_v55 = vpop.f32.mrf.mxu0 }
 0x181   : > { %v2320_v18 = vadd.f32 %v2241_v55, %v6126_v20 }
 0x182   : > { %v4608_v57 = vpop.f32.mrf.mxu1  ;;  %v4575_v46 = vpop.f32.mrf.mxu0 }
 0x183   : > { %v6269_v13 = vadd.f32 %v4608_v57, %v2322_v33  ;;  %v6272_v50 = vadd.f32 %v4575_v46, %v6128_v52 }
 0x184   : > { %v2567_v12 = vpop.f32.mrf.mxu1  ;;  %v2244_v24 = vpop.f32.mrf.mxu0 }
 0x185   : > { %v6274_v11 = vadd.f32 %v2567_v12, %v2320_v18  ;;  %v6277_v61 = vadd.f32 %v2244_v24, %v6140_v30 }
 0x186   : > { %v6279_v29 = vpop.f32.mrf.mxu1  ;;  %v4578_v44 = vpop.f32.mrf.mxu0 }
 0x187   : > { %v2326_v51 = vadd.f32 %v4578_v44, %v6143_v35 }
 0x188   : > { %v6282_v20 = vpop.f32.mrf.mxu1  ;;  %v2257_v60 = vpop.f32.mrf.mxu0 }
 0x189   : > { %v2324_v6 = vadd.f32 %v2257_v60, %v6150_v22 }
 0x18a   : > { %v4612_v0 = vpop.f32.mrf.mxu1  ;;  %v4579_v2 = vpop.f32.mrf.mxu0 }
 0x18b   : > { %v6285_v52 = vadd.f32 %v4612_v0, %v2326_v51  ;;  %v6288_v56 = vadd.f32 %v4579_v2, %v6152_v28 }
 0x18c   : > { %v2583_v45 = vpop.f32.mrf.mxu1  ;;  %v2260_v16 = vpop.f32.mrf.mxu0 }
 0x18d   : > { %6889 = vst [vmem:[#allocation22_spill] sm:$0xff] %v6288_v56  ;;  %v6290_v30 = vadd.f32 %v2583_v45, %v2324_v6  ;;  %v6293_v37 = vadd.f32 %v2260_v16, %v6162_v62 }
 0x18e   : > { %v6295_v35 = vpop.f32.mrf.mxu1  ;;  %v4582_v1 = vpop.f32.mrf.mxu0 }
 0x18f   : > { %6890 = vst [vmem:[#allocation16_spill] sm:$0xff] %v6293_v37  ;;  %6891 = vst [vmem:[#allocation21_spill] sm:$0xff] %v6295_v35  ;;  %v2330_v25 = vadd.f32 %v4582_v1, %v6165_v23 }
 0x190   : > { %v6298_v22 = vpop.f32.mrf.mxu1  ;;  %v2273_v32 = vpop.f32.mrf.mxu0 }
 0x191   : > { %6892 = vst [vmem:[#allocation25_spill] sm:$0xff] %v6298_v22  ;;  %v2328_v33 = vadd.f32 %v2273_v32, %v6170_v53 }
 0x192   : > { %v4616_v55 = vpop.f32.mrf.mxu1  ;;  %v4583_v18 = vpop.f32.mrf.mxu0 }
 0x193   : > { %v6301_v28 = vadd.f32 %v4616_v55, %v2330_v25  ;;  %v6304_v57 = vadd.f32 %v4583_v18, %v6172_v58 }
 0x194   : > { %v2599_v46 = vpop.f32.mrf.mxu1  ;;  %v2276_v12 = vpop.f32.mrf.mxu0 }
 0x195   : > { %6893 = vst [vmem:[#allocation44_spill] sm:$0xff] %v6304_v57  ;;  %v6306_v62 = vadd.f32 %v2599_v46, %v2328_v33  ;;  %v6309_v24 = vadd.f32 %v2276_v12, %v6179_v26 }
 0x196   : > { %v6311_v23 = vpop.f32.mrf.mxu1  ;;  %v4586_v44 = vpop.f32.mrf.mxu0 }
 0x197   : > { %6894 = vst [vmem:[#allocation24_spill] sm:$0xff] %v6309_v24  ;;  %6895 = vst [vmem:[#allocation20_spill] sm:$0xff] %v6311_v23  ;;  %v2334_v51 = vadd.f32 %v4586_v44, %v6182_v43 }
 0x198   : > { %v6314_v53 = vpop.f32.mrf.mxu1  ;;  %v2289_v60 = vpop.f32.mrf.mxu0 }
 0x199   : > { %6896 = vst [vmem:[#allocation32_spill] sm:$0xff] %v6314_v53  ;;  %v2332_v6 = vadd.f32 %v2289_v60, %v6187_v47 }
 0x19a   : > { %v4620_v0 = vpop.f32.mrf.mxu1  ;;  %v4587_v2 = vpop.f32.mrf.mxu0 }
 0x19b   : > { %v6317_v58 = vadd.f32 %v4620_v0, %v2334_v51  ;;  %v6320_v45 = vadd.f32 %v4587_v2, %v6189_v7 }
 0x19c   : > { %v2615_v16 = vpop.f32.mrf.mxu1  ;;  %v2292_v1 = vpop.f32.mrf.mxu0 }
 0x19d   : > { %6897 = vst [vmem:[#allocation23_spill] sm:$0xff] %v6320_v45  ;;  %v6322_v26 = vadd.f32 %v2615_v16, %v2332_v6  ;;  %v6325_v25 = vadd.f32 %v2292_v1, %v6195_v31 }
 0x19e   : > { %v6327_v43 = vpop.f32.mrf.mxu1  ;;  %v4626_v32 = vpop.f32.mrf.mxu0 }
 0x19f   : > { %6898 = vst [vmem:[#allocation28_spill] sm:$0xff] %v6325_v25  ;;  %6899 = vst [vmem:[#allocation36_spill] sm:$0xff] %v6327_v43  ;;  %v6330_v33 = vadd.f32 %v4626_v32, %v6198_v39 }
 0x1a0   : > { %v6332_v47 = vpop.f32.mrf.mxu1  ;;  %v2829_v55 = vpop.f32.mrf.mxu0 }
 0x1a1   : > { %6900 = vst [vmem:[#allocation48_spill] sm:$0xff] %v6332_v47  ;;  %v6335_v18 = vadd.f32 %v2829_v55, %v6205_v3 }
 0x1a2   : > { %v6337_v7 = vpop.f32.mrf.mxu1  ;;  %v6339_v46 = vpop.f32.mrf.mxu0 }
 0x1a4   : > { %v6341_v12 = vpop.f32.mrf.mxu1  ;;  %v6343_v31 = vpop.f32.mrf.mxu0 }
 0x1a6   : > { %v6345_v44 = vpop.f32.mrf.mxu1  ;;  %v4630_v51 = vpop.f32.mrf.mxu0 }
 0x1a7   : > { %v6348_v39 = vadd.f32 %v4630_v51, %v6218_v10 }
 0x1a8   : > { %v6350_v60 = vpop.f32.mrf.mxu1  ;;  %v2845_v6 = vpop.f32.mrf.mxu0 }
 0x1a9   : > { %v6353_v3 = vadd.f32 %v2845_v6, %v6225_v19 }
 0x1aa   : > { %v6355_v0 = vpop.f32.mrf.mxu0  ;;  %v6357_v2 = vpop.f32.mrf.mxu1 }
 0x1ac   : > { %v6359_v16 = vpop.f32.mrf.mxu0  ;;  %v6364_v55 = vpop.f32.mrf.mxu1 }
 0x1ae   : > { %v4634_v1 = vpop.f32.mrf.mxu0  ;;  %v6371_v19 = vpop.f32.mrf.mxu1 }
 0x1af   : > { %v6362_v32 = vadd.f32 %v4634_v1, %v6235_v54 }
 0x1b0   : > { %v2861_v10 = vpop.f32.mrf.mxu0  ;;  %v6378_v45 = vpop.f32.mrf.mxu1 }
 0x1b1   : > { %v6367_v51 = vadd.f32 %v2861_v10, %v6242_v34 }
 0x1b2   : > { %v6369_v47 = vpop.f32.mrf.mxu0  ;;  %v6385_v34 = vpop.f32.mrf.mxu1 }
 0x1b4   : > { %v6373_v6 = vpop.f32.mrf.mxu0  ;;  %v6392_v57 = vpop.f32.mrf.mxu1 }
 0x1b6   : > { %v4638_v25 = vpop.f32.mrf.mxu0 }
 0x1b7   : > { %v6376_v43 = vadd.f32 %v4638_v25, %v6252_v14 }
 0x1b8   : > { %v2877_v54 = vpop.f32.mrf.mxu0 }
 0x1b9   : > { %v6381_v1 = vadd.f32 %v2877_v54, %v6259_v27  ;;  %v6399_v27 = vpop.f32.mrf.mxu1 }
 0x1ba   : > { %v6383_v53 = vpop.f32.mrf.mxu0 }
 0x1bb   : > { %v6406_v56 = vpop.f32.mrf.mxu1 }
 0x1bc   : > { %v6387_v10 = vpop.f32.mrf.mxu0 }
 0x1be   : > { %v4642_v24 = vpop.f32.mrf.mxu0 }
 0x1bf   : > { %v6390_v23 = vadd.f32 %v4642_v24, %v6269_v13 }
 0x1c0   : > { %v2893_v14 = vpop.f32.mrf.mxu0 }
 0x1c1   : > { %6901 = vst [vmem:[#allocation34_spill] sm:$0xff] %v6390_v23  ;;  %v6395_v25 = vadd.f32 %v2893_v14, %v6274_v11  ;;  %v6413_v11 = vpop.f32.mrf.mxu1 }
 0x1c2   : > { %v6397_v22 = vpop.f32.mrf.mxu0 }
 0x1c3   : > { %6902 = vst [vmem:[#allocation31_spill] sm:$0xff] %v6395_v25  ;;  %6903 = vst [vmem:[#allocation43_spill] sm:$0xff] %v6397_v22 }
 0x1c4   : > { %v6401_v54 = vpop.f32.mrf.mxu0 }
 0x1c5   : > { %6904 = vst [vmem:[#allocation33_spill] sm:$0xff] %v6401_v54  ;;  %v6420_v54 = vpop.f32.mrf.mxu1 }
 0x1c6   : > { %v4646_v37 = vpop.f32.mrf.mxu0 }
 0x1c7   : > { %v6404_v35 = vadd.f32 %v4646_v37, %v6285_v52 }
 0x1c8   : > { %v2909_v13 = vpop.f32.mrf.mxu0 }
 0x1c9   : > { %6905 = vst [vmem:[#allocation39_spill] sm:$0xff] %v6404_v35  ;;  %v6409_v24 = vadd.f32 %v2909_v13, %v6290_v30  ;;  %v6427_v30 = vpop.f32.mrf.mxu1 }
 0x1ca   : > { %v6411_v23 = vpop.f32.mrf.mxu0 }
 0x1cb   : > { %6906 = vst [vmem:[#allocation53_spill] sm:$0xff] %v6409_v24  ;;  %6907 = vst [vmem:[#allocation47_spill] sm:$0xff] %v6411_v23 }
 0x1cc   : > { %v6415_v14 = vpop.f32.mrf.mxu0 }
 0x1cd   : > { %6908 = vst [vmem:[#allocation42_spill] sm:$0xff] %v6415_v14  ;;  %v6434_v14 = vpop.f32.mrf.mxu1 }
 0x1ce   : > { %v4650_v25 = vpop.f32.mrf.mxu0 }
 0x1cf   : > { %v6418_v22 = vadd.f32 %v4650_v25, %v6301_v28 }
 0x1d0   : > { %v2925_v52 = vpop.f32.mrf.mxu0 }
 0x1d1   : > { %6909 = vst [vmem:[#allocation49_spill] sm:$0xff] %v6418_v22  ;;  %v6423_v37 = vadd.f32 %v2925_v52, %v6306_v62  ;;  %v2633_v62 = vadd.f32 %v6209_v42, %v6203_v8  ;;  %v6443_v52 = vpop.f32.mrf.mxu1  ;;  %v6460_v42 = vld [vmem:[%s6711_s2] ss:$0 sm:$0xff] }
 0x1d2   : > { %v6425_v35 = vpop.f32.mrf.mxu0 }
 0x1d3   : > { %6910 = vst [vmem:[#allocation40_spill] sm:$0xff] %v6423_v37  ;;  %v6455_v8 = vpop.f32.mrf.mxu1 }
 0x1d4   : > { %v6429_v13 = vpop.f32.mrf.mxu0 }
 0x1d5   : > { %6911 = vst [vmem:[#allocation5_spill] sm:$0xff] %v6429_v13  ;;  %v2631_v13 = vadd.f32 %v6212_v5, %v6207_v48 }
 0x1d6   : > { %v4654_v24 = vpop.f32.mrf.mxu0 }
 0x1d7   : > { %v6432_v23 = vadd.f32 %v4654_v24, %v6317_v58  ;;  %v3252_v58 = vadd.f32 %v6337_v7, %v6330_v33  ;;  %v2959_v24 = vadd.f32 %v6339_v46, %v2633_v62  ;;  %v2637_v7 = vadd.f32 %v6229_v36, %v6223_v17  ;;  %v6470_v62 = vpop.f32.mrf.mxu1 }
 0x1d8   : > { %v2941_v28 = vpop.f32.mrf.mxu0 }
 0x1d9   : > { %6912 = vst [vmem:[#allocation51_spill] sm:$0xff] %v6432_v23  ;;  %v6437_v25 = vadd.f32 %v2941_v28, %v6322_v26  ;;  %v3250_v26 = vadd.f32 %v6341_v12, %v6335_v18  ;;  %v2957_v28 = vadd.f32 %v6343_v31, %v2631_v13  ;;  %v3253_v5 = vadd.f32 %v6345_v44, %v2959_v24 }
 0x1da   : > { %v6439_v22 = vpop.f32.mrf.mxu0  ;;  %v2635_v31 = vadd.f32 %v6232_v21, %v6227_v63  ;;  %v2963_v13 = vadd.f32 %v6355_v0, %v2637_v7  ;;  %v3256_v44 = vadd.f32 %v6357_v2, %v6348_v39 }
 0x1db   : > { %6913 = vst [vmem:[#allocation9_spill] sm:$0xff] %v6437_v25  ;;  %v3251_v18 = vadd.f32 %v6350_v60, %v2957_v28  ;;  %v3254_v60 = vadd.f32 %v6364_v55, %v6353_v3  ;;  %v2641_v3 = vadd.f32 %v6246_v38, %v6240_v4 }
 0x1dc   : > { %v6445_v37 = vpop.f32.mrf.mxu0 }
 0x1de   : > { %v4694_v23 = vpop.f32.mrf.mxu0 }
 0x1df   : > { %v3578_v25 = vadd.f32 %v4694_v23, %v3252_v58 }
 0x1e0   : > { %v3449_v48 = vpop.f32.mrf.mxu0 }
 0x1e1   : > { %v3576_v33 = vadd.f32 %v3449_v48, %v3250_v26  ;;  %v3617_v12 = vadd.f32 %v6460_v42, %v3578_v25  ;;  %v2961_v25 = vadd.f32 %v6359_v16, %v2635_v31  ;;  %v3257_v48 = vadd.f32 %v6371_v19, %v2963_v13 }
 0x1e2   : > { %v4695_v46 = vpop.f32.mrf.mxu0  ;;  %v2639_v19 = vadd.f32 %v6249_v9, %v6244_v59  ;;  %v2967_v31 = vadd.f32 %v6369_v47, %v2641_v3  ;;  %v3262_v3 = vadd.f32 %v6420_v54, %v6381_v1  ;;  %v2649_v1 = vadd.f32 %v6279_v29, %v6272_v50 }
 0x1e3   : > { %v3579_v23 = vadd.f32 %v4695_v46, %v3253_v5  ;;  %v3615_v24 = vadd.f32 %v6460_v42, %v3576_v33  ;;  %v3649_v63 = vmax.f32 %v3617_v12, 0.0  ;;  %v6481_v5 = vpop.f32.mrf.mxu1  ;;  %v3255_v16 = vadd.f32 %v6378_v45, %v2961_v25 }
 0x1e4   : > { %v3452_v58 = vpop.f32.mrf.mxu0 }
 0x1e5   : > { %v3618_v17 = vadd.f32 %v6460_v42, %v3579_v23  ;;  %v3577_v36 = vadd.f32 %v3452_v58, %v3251_v18  ;;  %v3647_v2 = vmax.f32 %v3615_v24, 0.0  ;;  %v6490_v13 = vpop.f32.mrf.mxu1  ;;  %v3258_v24 = vadd.f32 %v6392_v57, %v6367_v51 }
 0x1e6   : > { %v4698_v26 = vpop.f32.mrf.mxu0  ;;  %v2645_v57 = vadd.f32 %v6263_v41, %v6257_v49 }
 0x1e7   : > { %v3650_v21 = vmax.f32 %v3618_v17, 0.0  ;;  %v3616_v0 = vadd.f32 %v6460_v42, %v3577_v36  ;;  %v3582_v28 = vadd.f32 %v4698_v26, %v3256_v44  ;;  %v3260_v44 = vadd.f32 %v6385_v34, %v6362_v32  ;;  %v6501_v34 = vpop.f32.mrf.mxu1 }
 0x1e8   : > { %v3465_v39 = vpop.f32.mrf.mxu0  ;;  %v2965_v17 = vadd.f32 %v6373_v6, %v2639_v19  ;;  %v3261_v32 = vadd.f32 %v6399_v27, %v2967_v31  ;;  %v2643_v27 = vadd.f32 %v6266_v15, %v6261_v40 }
 0x1e9   : > { %v3680_v33 = vpack.c.bf16 %v3650_v21, %v3649_v63  ;;  %v3648_v7 = vmax.f32 %v3616_v0, 0.0  ;;  %v3580_v46 = vadd.f32 %v3465_v39, %v3254_v60  ;;  %v3621_v18 = vadd.f32 %v6460_v42, %v3582_v28 }
 0x1ea   : > { %v4699_v55 = vpop.f32.mrf.mxu0  ;;  %v3259_v6 = vadd.f32 %v6406_v56, %v2965_v17 }
 0x1eb   : > { %v3583_v12 = vadd.f32 %v4699_v55, %v3257_v48  ;;  %v3679_v23 = vpack.c.bf16 %v3648_v7, %v3647_v2  ;;  %v3619_v4 = vadd.f32 %v6460_v42, %v3580_v46  ;;  %v3653_v9 = vmax.f32 %v3621_v18, 0.0 }
 0x1ec   : > { %v3468_v58 = vpop.f32.mrf.mxu0  ;;  %v2971_v2 = vadd.f32 %v6383_v53, %v2645_v57  ;;  %v3264_v46 = vadd.f32 %v6413_v11, %v6376_v43  ;;  %v2969_v55 = vadd.f32 %v6387_v10, %v2643_v27  ;;  %v6919_v27 = vld [vmem:[#allocation21_spill] sm:$0xff] }
 0x1ed   : > { %v3622_v38 = vadd.f32 %v6460_v42, %v3583_v12  ;;  %v3581_v45 = vadd.f32 %v3468_v58, %v3255_v16  ;;  %4740 = vmatprep.mubr.bf16.mxu1 %v3679_v23  ;;  %v3651_v26 = vmax.f32 %v3619_v4, 0.0 }
 0x1ee   : > { %v4702_v59 = vpop.f32.mrf.mxu0  ;;  %4741 = vmatmul.mubr.bf16.vlgmr.msra.gmra.mxu1 %v3680_v33  ;;  %v6510_v33 = vpop.f32.mrf.mxu1  ;;  %v3265_v43 = vadd.f32 %v6427_v30, %v2971_v2  ;;  %v3263_v54 = vadd.f32 %v6434_v14, %v2969_v55  ;;  %v2647_v30 = vadd.f32 %v6282_v20, %v6277_v61  ;;  %v6916_v14 = vld [vmem:[#allocation31_spill] sm:$0xff] }
 0x1ef   : > { %v3654_v47 = vmax.f32 %v3622_v38, 0.0  ;;  %v3620_v36 = vadd.f32 %v6460_v42, %v3581_v45  ;;  %v3586_v60 = vadd.f32 %v4702_v59, %v3260_v44  ;;  %v6914_v45 = vld [vmem:[#allocation43_spill] sm:$0xff] }
 0x1f0   : > { %v3481_v25 = vpop.f32.mrf.mxu0  ;;  %v6521_v11 = vpop.f32.mrf.mxu1 }
 0x1f1   : > { %v3682_v63 = vpack.c.bf16 %v3654_v47, %v3653_v9  ;;  %v3652_v21 = vmax.f32 %v3620_v36, 0.0  ;;  %v3584_v0 = vadd.f32 %v3481_v25, %v3258_v24  ;;  %v3625_v28 = vadd.f32 %v6460_v42, %v3586_v60  ;;  %v6915_v9 = vld [vmem:[#allocation34_spill] sm:$0xff] }
 0x1f2   : > { %v4703_v51 = vpop.f32.mrf.mxu0  ;;  %v2975_v24 = vadd.f32 %v6914_v45, %v2649_v1  ;;  %v4684_v17 = vpop.f32.mrf.mxu1  ;;  %v3268_v47 = vadd.f32 %v6443_v52, %v6915_v9  ;;  %v3266_v60 = vadd.f32 %v6455_v8, %v6916_v14 }
 0x1f3   : > { %v3587_v48 = vadd.f32 %v4703_v51, %v3261_v32  ;;  %v3681_v39 = vpack.c.bf16 %v3652_v21, %v3651_v26  ;;  %v3623_v49 = vadd.f32 %v6460_v42, %v3584_v0  ;;  %v3657_v15 = vmax.f32 %v3625_v28, 0.0  ;;  %v6917_v32 = vld [vmem:[#allocation33_spill] sm:$0xff] }
 0x1f4   : > { %v3484_v7 = vpop.f32.mrf.mxu0  ;;  %v2973_v25 = vadd.f32 %v6917_v32, %v2647_v30  ;;  %v3269_v52 = vadd.f32 %v6470_v62, %v2975_v24  ;;  %v3219_v0 = vpop.f32.mrf.mxu1  ;;  %v6922_v62 = vld [vmem:[#allocation47_spill] sm:$0xff] }
 0x1f5   : > { %v3626_v41 = vadd.f32 %v6460_v42, %v3587_v48  ;;  %v3585_v56 = vadd.f32 %v3484_v7, %v3259_v6  ;;  %4744 = vmatprep.mubr.bf16.mxu1 %v3681_v39  ;;  %v3655_v23 = vmax.f32 %v3623_v49, 0.0  ;;  %v6918_v39 = vld [vmem:[#allocation22_spill] sm:$0xff] }
 0x1f6   : > { %v4706_v40 = vpop.f32.mrf.mxu0  ;;  %4745 = vmatmul.mubr.bf16.gmra.mxu1 %v3682_v63  ;;  %v2653_v8 = vadd.f32 %v6919_v27, %v6918_v39  ;;  %v3267_v7 = vadd.f32 %v6481_v5, %v2973_v25  ;;  %v6924_v5 = vld [vmem:[#allocation53_spill] sm:$0xff]  ;;  %v6928_v25 = vld [vmem:[#allocation24_spill] sm:$0xff] }
 0x1f7   : > { %v3658_v53 = vmax.f32 %v3626_v41, 0.0  ;;  %v3624_v16 = vadd.f32 %v6460_v42, %v3585_v56  ;;  %v3590_v18 = vadd.f32 %v4706_v40, %v3264_v46  ;;  %v6920_v56 = vld [vmem:[#allocation16_spill] sm:$0xff] }
 0x1f8   : > { %v3497_v12 = vpop.f32.mrf.mxu0  ;;  %v2979_v40 = vadd.f32 %v6922_v62, %v2653_v8  ;;  %v6933_v62 = vld [vmem:[#allocation23_spill] sm:$0xff] }
 0x1f9   : > { %v3684_v19 = vpack.c.bf16 %v3658_v53, %v3657_v15  ;;  %v3656_v31 = vmax.f32 %v3624_v16, 0.0  ;;  %v3588_v58 = vadd.f32 %v3497_v12, %v3262_v3  ;;  %v3629_v44 = vadd.f32 %v6460_v42, %v3590_v18  ;;  %v6921_v3 = vld [vmem:[#allocation25_spill] sm:$0xff]  ;;  %v4685_v15 = vpop.f32.mrf.mxu1  ;;  %v6923_v16 = vld [vmem:[#allocation39_spill] sm:$0xff] }
 0x1fa   : > { %v4707_v10 = vpop.f32.mrf.mxu0  ;;  %v2651_v55 = vadd.f32 %v6921_v3, %v6920_v56  ;;  %v3272_v18 = vadd.f32 %v6490_v13, %v6923_v16  ;;  %v3273_v13 = vadd.f32 %v6510_v33, %v2979_v40  ;;  %v6934_v40 = vld [vmem:[#allocation36_spill] sm:$0xff] }
 0x1fb   : > { %v3591_v4 = vadd.f32 %v4707_v10, %v3265_v43  ;;  %v3683_v38 = vpack.c.bf16 %v3656_v31, %v3655_v23  ;;  %v3627_v36 = vadd.f32 %v6460_v42, %v3588_v58  ;;  %v3661_v61 = vmax.f32 %v3629_v44, 0.0  ;;  %v6925_v31 = vld [vmem:[#allocation42_spill] sm:$0xff] }
 0x1fc   : > { %v3500_v59 = vpop.f32.mrf.mxu0  ;;  %v2977_v58 = vadd.f32 %v6925_v31, %v2651_v55 }
 0x1fd   : > { %v3630_v50 = vadd.f32 %v6460_v42, %v3591_v4  ;;  %v3589_v29 = vadd.f32 %v3500_v59, %v3263_v54  ;;  %4748 = vmatprep.mubr.bf16.mxu1 %v3683_v38  ;;  %v3659_v51 = vmax.f32 %v3627_v36, 0.0  ;;  %v3222_v38 = vpop.f32.mrf.mxu1  ;;  %v6927_v36 = vld [vmem:[#allocation20_spill] sm:$0xff] }
 0x1fe   : > { %v4710_v26 = vpop.f32.mrf.mxu0  ;;  %4749 = vmatmul.mubr.bf16.gmra.mxu1 %v3684_v19  ;;  %v3270_v19 = vadd.f32 %v6501_v34, %v6924_v5  ;;  %v6936_v5 = vld [vmem:[#allocation48_spill] sm:$0xff] }
 0x1ff   : > { %v3662_v20 = vmax.f32 %v3630_v50, 0.0  ;;  %v3628_v63 = vadd.f32 %v6460_v42, %v3589_v29  ;;  %v3594_v21 = vadd.f32 %v4710_v26, %v3268_v47  ;;  %v6926_v47 = vld [vmem:[#allocation44_spill] sm:$0xff]  ;;  %v3271_v29 = vadd.f32 %v6521_v11, %v2977_v58 }
 0x200   : > { %v3513_v57 = vpop.f32.mrf.mxu0  ;;  %v2657_v34 = vadd.f32 %v6927_v36, %v6926_v47  ;;  %v6929_v26 = vld [vmem:[#allocation32_spill] sm:$0xff] }
 0x201   : > { %v3686_v6 = vpack.c.bf16 %v3662_v20, %v3661_v61  ;;  %v3660_v28 = vmax.f32 %v3628_v63, 0.0  ;;  %v3592_v48 = vadd.f32 %v3513_v57, %v3266_v60  ;;  %v3633_v46 = vadd.f32 %v6460_v42, %v3594_v21  ;;  %v4688_v20 = vpop.f32.mrf.mxu1  ;;  %v6930_v21 = vld [vmem:[#allocation49_spill] sm:$0xff]  ;;  %v6931_v11 = vld [vmem:[#allocation40_spill] sm:$0xff] }
 0x202   : > { %v4711_v2 = vpop.f32.mrf.mxu0  ;;  %v2655_v61 = vadd.f32 %v6929_v26, %v6928_v25  ;;  %v2983_v33 = vadd.f32 %v6425_v35, %v2657_v34 }
 0x203   : > { %v3595_v49 = vadd.f32 %v4711_v2, %v3269_v52  ;;  %v3685_v41 = vpack.c.bf16 %v3660_v28, %v3659_v51  ;;  %v3631_v43 = vadd.f32 %v6460_v42, %v3592_v48  ;;  %v3665_v10 = vmax.f32 %v3633_v46, 0.0  ;;  %v6932_v48 = vld [vmem:[#allocation5_spill] sm:$0xff] }
 0x204   : > { %v3516_v53 = vpop.f32.mrf.mxu0  ;;  %v3276_v52 = vadd.f32 %v4684_v17, %v6930_v21  ;;  %v3274_v28 = vadd.f32 %v3219_v0, %v6931_v11  ;;  %v2981_v39 = vadd.f32 %v6932_v48, %v2655_v61  ;;  %v3277_v46 = vadd.f32 %v4685_v15, %v2983_v33 }
 0x205   : > { %v3634_v12 = vadd.f32 %v6460_v42, %v3595_v49  ;;  %v3593_v23 = vadd.f32 %v3516_v53, %v3267_v7  ;;  %4752 = vmatprep.mubr.bf16.mxu1 %v3685_v41  ;;  %v3663_v45 = vmax.f32 %v3631_v43, 0.0  ;;  %v3235_v49 = vpop.f32.mrf.mxu1  ;;  %v2661_v53 = vadd.f32 %v6934_v40, %v6933_v62 }
 0x206   : > { %v4714_v1 = vpop.f32.mrf.mxu0  ;;  %4753 = vmatmul.mubr.bf16.gmra.mxu1 %v3686_v6  ;;  %v3275_v16 = vadd.f32 %v3222_v38, %v2981_v39  ;;  %v6590_v39 = vld [vmem:[%s6713_s4] ss:$0 sm:$0xff] }
 0x207   : > { %v3666_v54 = vmax.f32 %v3634_v12, 0.0  ;;  %v3632_v44 = vadd.f32 %v6460_v42, %v3593_v23  ;;  %v3598_v4 = vadd.f32 %v4714_v1, %v3272_v18  ;;  %v6935_v23 = vld [vmem:[#allocation28_spill] sm:$0xff]  ;;  %v2987_v15 = vadd.f32 %v6439_v22, %v2661_v53  ;;  %v4689_v31 = vpop.f32.mrf.mxu1  ;;  %v6937_v1 = vld [vmem:[#allocation51_spill] sm:$0xff] }
 0x208   : > { %v3529_v30 = vpop.f32.mrf.mxu0 }
 0x209   : > { %v3688_v24 = vpack.c.bf16 %v3666_v54, %v3665_v10  ;;  %v3664_v59 = vmax.f32 %v3632_v44, 0.0  ;;  %v3596_v9 = vadd.f32 %v3529_v30, %v3270_v19  ;;  %v3637_v14 = vadd.f32 %v6460_v42, %v3598_v4  ;;  %v3238_v36 = vpop.f32.mrf.mxu1 }
 0x20a   : > { %v4715_v50 = vpop.f32.mrf.mxu0  ;;  %v2659_v19 = vadd.f32 %v6936_v5, %v6935_v23  ;;  %v3280_v10 = vadd.f32 %v4688_v20, %v6937_v1  ;;  %v3281_v47 = vadd.f32 %v4689_v31, %v2987_v15 }
 0x20b   : > { %v3599_v60 = vadd.f32 %v4715_v50, %v3273_v13  ;;  %v3687_v32 = vpack.c.bf16 %v3664_v59, %v3663_v45  ;;  %v3635_v57 = vadd.f32 %v6460_v42, %v3596_v9  ;;  %v3669_v8 = vmax.f32 %v3637_v14, 0.0  ;;  %v6938_v13 = vld [vmem:[#allocation9_spill] sm:$0xff] }
 0x20c   : > { %v3532_v63 = vpop.f32.mrf.mxu0  ;;  %v3278_v38 = vadd.f32 %v3235_v49, %v6938_v13  ;;  %v2985_v30 = vadd.f32 %v6445_v37, %v2659_v19 }
 0x20d   : > { %v3638_v51 = vadd.f32 %v6460_v42, %v3599_v60  ;;  %v3597_v6 = vadd.f32 %v3532_v63, %v3271_v29  ;;  %4756 = vmatprep.mubr.bf16.mxu1 %v3687_v32  ;;  %v3667_v41 = vmax.f32 %v3635_v57, 0.0 }
 0x20e   : > { %v4718_v27 = vpop.f32.mrf.mxu0  ;;  %4757 = vmatmul.mubr.bf16.gmra.mxu1 %v3688_v24  ;;  %v3279_v25 = vadd.f32 %v3238_v36, %v2985_v30 }
 0x20f   : > { %v3670_v2 = vmax.f32 %v3638_v51, 0.0  ;;  %v3636_v35 = vadd.f32 %v6460_v42, %v3597_v6  ;;  %v3602_v7 = vadd.f32 %v4718_v27, %v3276_v52 }
 0x210   : > { %v3545_v17 = vpop.f32.mrf.mxu0 }
 0x211   : > { %v3690_v56 = vpack.c.bf16 %v3670_v2, %v3669_v8  ;;  %v3668_v3 = vmax.f32 %v3636_v35, 0.0  ;;  %v3600_v55 = vadd.f32 %v3545_v17, %v3274_v28  ;;  %v3641_v18 = vadd.f32 %v6460_v42, %v3602_v7 }
 0x212   : > { %v4719_v0 = vpop.f32.mrf.mxu0 }
 0x213   : > { %v3603_v43 = vadd.f32 %v4719_v0, %v3277_v46  ;;  %v3689_v12 = vpack.c.bf16 %v3668_v3, %v3667_v41  ;;  %v3639_v54 = vadd.f32 %v6460_v42, %v3600_v55  ;;  %v3673_v24 = vmax.f32 %v3641_v18, 0.0 }
 0x214   : > { %v3548_v58 = vpop.f32.mrf.mxu0 }
 0x215   : > { %v3642_v44 = vadd.f32 %v6460_v42, %v3603_v43  ;;  %v3601_v4 = vadd.f32 %v3548_v58, %v3275_v16  ;;  %4760 = vmatprep.mubr.bf16.mxu1 %v3689_v12  ;;  %v3671_v50 = vmax.f32 %v3639_v54, 0.0 }
 0x216   : > { %v4722_v45 = vpop.f32.mrf.mxu0  ;;  %4761 = vmatmul.mubr.bf16.gmra.mxu1 %v3690_v56 }
 0x217   : > { %v3674_v59 = vmax.f32 %v3642_v44, 0.0  ;;  %v3640_v22 = vadd.f32 %v6460_v42, %v3601_v4  ;;  %v3606_v9 = vadd.f32 %v4722_v45, %v3280_v10 }
 0x218   : > { %v3561_v34 = vpop.f32.mrf.mxu0 }
 0x219   : > { %v3692_v29 = vpack.c.bf16 %v3674_v59, %v3673_v24  ;;  %v3672_v14 = vmax.f32 %v3640_v22, 0.0  ;;  %v3604_v60 = vadd.f32 %v3561_v34, %v3278_v38  ;;  %v3645_v26 = vadd.f32 %v6460_v42, %v3606_v9 }
 0x21a   : > { %v4723_v32 = vpop.f32.mrf.mxu0 }
 0x21b   : > { %v3607_v61 = vadd.f32 %v4723_v32, %v3281_v47  ;;  %v3691_v37 = vpack.c.bf16 %v3672_v14, %v3671_v50  ;;  %v3643_v20 = vadd.f32 %v6460_v42, %v3604_v60  ;;  %v3677_v52 = vmax.f32 %v3645_v26, 0.0 }
 0x21c   : > { %v3564_v33 = vpop.f32.mrf.mxu0 }
 0x21d   : > { %v3646_v63 = vadd.f32 %v6460_v42, %v3607_v61  ;;  %v3605_v21 = vadd.f32 %v3564_v33, %v3279_v25  ;;  %4764 = vmatprep.mubr.bf16.mxu1 %v3691_v37  ;;  %v3675_v6 = vmax.f32 %v3643_v20, 0.0 }
 0x21e   : > { %4765 = vmatmul.mubr.bf16.gmra.mxu1 %v3692_v29 }
 0x21f   : > { %v3678_v57 = vmax.f32 %v3646_v63, 0.0  ;;  %v3644_v51 = vadd.f32 %v6460_v42, %v3605_v21 }
 0x221   : > { %v3694_v11 = vpack.c.bf16 %v3678_v57, %v3677_v52  ;;  %v3676_v28 = vmax.f32 %v3644_v51, 0.0 }
 0x223   : > { %v3693_v48 = vpack.c.bf16 %v3676_v28, %v3675_v6 }
 0x225   : > { %4768 = vmatprep.mubr.bf16.mxu1 %v3693_v48 }
 0x226   : > { %4769 = vmatmul.mubr.bf16.gmra.mxu1 %v3694_v11 }
 0x2ae   : > { %v4742_v27 = vpop.f32.mrf.mxu1 }
 0x2af   : > { %v3809_v8 = vadd.f32 %v4742_v27, %v6590_v39 }
 0x2b0   : > { %v3800_v2 = vpop.f32.mrf.mxu1 }
 0x2b1   : > { %3929 = vst [vmem:[%s6593_s25 + $0x10] sm:$0xff] %v3809_v8  ;;  %v3801_v42 = vadd.f32 %v6590_v39, %v3800_v2 }
 0x2b2   : > { %v4743_v35 = vpop.f32.mrf.mxu1 }
 0x2b3   : > { %3927 = vst [vmem:[%s6593_s25] sm:$0xff] %v3801_v42  ;;  %v3812_v7 = vadd.f32 %v4743_v35, %v6590_v39 }
 0x2b4   : > { %v3803_v46 = vpop.f32.mrf.mxu1 }
 0x2b5   : > { %3930 = vst [vmem:[%s6593_s25 + $0x18] sm:$0xff] %v3812_v7  ;;  %v3804_v49 = vadd.f32 %v6590_v39, %v3803_v46 }
 0x2b6   : > { %v4746_v17 = vpop.f32.mrf.mxu1 }
 0x2b7   : > { %3928 = vst [vmem:[%s6593_s25 + $0x8] sm:$0xff] %v3804_v49  ;;  %v3825_v41 = vadd.f32 %v4746_v17, %v6590_v39 }
 0x2b8   : > { %v3816_v56 = vpop.f32.mrf.mxu1 }
 0x2b9   : > { %3933 = vst [vmem:[%s6593_s25 + $0x30] sm:$0xff] %v3825_v41  ;;  %v3817_v3 = vadd.f32 %v6590_v39, %v3816_v56 }
 0x2ba   : > { %v4747_v55 = vpop.f32.mrf.mxu1 }
 0x2bb   : > { %3931 = vst [vmem:[%s6593_s25 + $0x20] sm:$0xff] %v3817_v3  ;;  %v3828_v62 = vadd.f32 %v4747_v55, %v6590_v39 }
 0x2bc   : > { %v3819_v40 = vpop.f32.mrf.mxu1 }
 0x2bd   : > { %3934 = vst [vmem:[%s6593_s25 + $0x38] sm:$0xff] %v3828_v62  ;;  %v3820_v53 = vadd.f32 %v6590_v39, %v3819_v40 }
 0x2be   : > { %v4750_v0 = vpop.f32.mrf.mxu1 }
 0x2bf   : > { %3932 = vst [vmem:[%s6593_s25 + $0x28] sm:$0xff] %v3820_v53  ;;  %v3841_v16 = vadd.f32 %v4750_v0, %v6590_v39 }
 0x2c0   : > { %v3832_v18 = vpop.f32.mrf.mxu1 }
 0x2c1   : > { %3937 = vst [vmem:[%s6593_s25 + $0x50] sm:$0xff] %v3841_v16  ;;  %v3833_v43 = vadd.f32 %v6590_v39, %v3832_v18 }
 0x2c2   : > { %v4751_v12 = vpop.f32.mrf.mxu1 }
 0x2c3   : > { %3935 = vst [vmem:[%s6593_s25 + $0x40] sm:$0xff] %v3833_v43  ;;  %v3844_v23 = vadd.f32 %v4751_v12, %v6590_v39 }
 0x2c4   : > { %v3835_v5 = vpop.f32.mrf.mxu1 }
 0x2c5   : > { %3938 = vst [vmem:[%s6593_s25 + $0x58] sm:$0xff] %v3844_v23  ;;  %v3836_v19 = vadd.f32 %v6590_v39, %v3835_v5 }
 0x2c6   : > { %v4754_v15 = vpop.f32.mrf.mxu1 }
 0x2c7   : > { %3936 = vst [vmem:[%s6593_s25 + $0x48] sm:$0xff] %v3836_v19  ;;  %v3857_v31 = vadd.f32 %v4754_v15, %v6590_v39 }
 0x2c8   : > { %v3848_v58 = vpop.f32.mrf.mxu1 }
 0x2c9   : > { %3941 = vst [vmem:[%s6593_s25 + $0x70] sm:$0xff] %v3857_v31  ;;  %v3849_v1 = vadd.f32 %v6590_v39, %v3848_v58 }
 0x2ca   : > { %v4755_v10 = vpop.f32.mrf.mxu1 }
 0x2cb   : > { %3939 = vst [vmem:[%s6593_s25 + $0x60] sm:$0xff] %v3849_v1  ;;  %v3860_v54 = vadd.f32 %v4755_v10, %v6590_v39 }
 0x2cc   : > { %v3851_v44 = vpop.f32.mrf.mxu1 }
 0x2cd   : > { %3942 = vst [vmem:[%s6593_s25 + $0x78] sm:$0xff] %v3860_v54  ;;  %v3852_v4 = vadd.f32 %v6590_v39, %v3851_v44 }
 0x2ce   : > { %v4758_v13 = vpop.f32.mrf.mxu1 }
 0x2cf   : > { %3940 = vst [vmem:[%s6593_s25 + $0x68] sm:$0xff] %v3852_v4  ;;  %v3873_v38 = vadd.f32 %v4758_v13, %v6590_v39 }
 0x2d0   : > { %v3864_v30 = vpop.f32.mrf.mxu1 }
 0x2d1   : > { %3945 = vst [vmem:[%s6593_s25 + $0x90] sm:$0xff] %v3873_v38  ;;  %v3865_v45 = vadd.f32 %v6590_v39, %v3864_v30 }
 0x2d2   : > { %v4759_v24 = vpop.f32.mrf.mxu1 }
 0x2d3   : > { %3943 = vst [vmem:[%s6593_s25 + $0x80] sm:$0xff] %v3865_v45  ;;  %v3876_v59 = vadd.f32 %v4759_v24, %v6590_v39 }
 0x2d4   : > { %v3867_v22 = vpop.f32.mrf.mxu1 }
 0x2d5   : > { %3946 = vst [vmem:[%s6593_s25 + $0x98] sm:$0xff] %v3876_v59  ;;  %v3868_v9 = vadd.f32 %v6590_v39, %v3867_v22 }
 0x2d6   : > { %v4762_v47 = vpop.f32.mrf.mxu1 }
 0x2d7   : > { %3944 = vst [vmem:[%s6593_s25 + $0x88] sm:$0xff] %v3868_v9  ;;  %v3889_v36 = vadd.f32 %v4762_v47, %v6590_v39 }
 0x2d8   : > { %v3880_v34 = vpop.f32.mrf.mxu1 }
 0x2d9   : > { %3949 = vst [vmem:[%s6593_s25 + $0xb0] sm:$0xff] %v3889_v36  ;;  %v3881_v50 = vadd.f32 %v6590_v39, %v3880_v34 }
 0x2da   : > { %v4763_v29 = vpop.f32.mrf.mxu1 }
 0x2db   : > { %3947 = vst [vmem:[%s6593_s25 + $0xa0] sm:$0xff] %v3881_v50  ;;  %v3892_v14 = vadd.f32 %v4763_v29, %v6590_v39 }
 0x2dc   : > { %v3883_v60 = vpop.f32.mrf.mxu1 }
 0x2dd   : > { %3950 = vst [vmem:[%s6593_s25 + $0xb8] sm:$0xff] %v3892_v14  ;;  %v3884_v32 = vadd.f32 %v6590_v39, %v3883_v60 }
 0x2de   : > { %v4766_v25 = vpop.f32.mrf.mxu1 }
 0x2df   : > { %3948 = vst [vmem:[%s6593_s25 + $0xa8] sm:$0xff] %v3884_v32  ;;  %v3905_v26 = vadd.f32 %v4766_v25, %v6590_v39 }
 0x2e0   : > { %v3896_v61 = vpop.f32.mrf.mxu1 }
 0x2e1   : > { %3953 = vst [vmem:[%s6593_s25 + $0xd0] sm:$0xff] %v3905_v26  ;;  %v3897_v37 = vadd.f32 %v6590_v39, %v3896_v61 }
 0x2e2   : > { %v4767_v33 = vpop.f32.mrf.mxu1 }
 0x2e3   : > { %3951 = vst [vmem:[%s6593_s25 + $0xc0] sm:$0xff] %v3897_v37  ;;  %v3908_v20 = vadd.f32 %v4767_v33, %v6590_v39 }
 0x2e4   : > { %v3899_v63 = vpop.f32.mrf.mxu1 }
 0x2e5   : > { %3954 = vst [vmem:[%s6593_s25 + $0xd8] sm:$0xff] %v3908_v20  ;;  %v3900_v21 = vadd.f32 %v6590_v39, %v3899_v63 }
 0x2e6   : > { %v4770_v52 = vpop.f32.mrf.mxu1 }
 0x2e7   : > { %3952 = vst [vmem:[%s6593_s25 + $0xc8] sm:$0xff] %v3900_v21  ;;  %v3921_v57 = vadd.f32 %v4770_v52, %v6590_v39 }
 0x2e8   : > { %v3912_v51 = vpop.f32.mrf.mxu1 }
 0x2e9   : > { %3957 = vst [vmem:[%s6593_s25 + $0xf0] sm:$0xff] %v3921_v57  ;;  %v3913_v6 = vadd.f32 %v6590_v39, %v3912_v51 }
 0x2ea   : > { %v4771_v11 = vpop.f32.mrf.mxu1 }
 0x2eb   : > { %3955 = vst [vmem:[%s6593_s25 + $0xe0] sm:$0xff] %v3913_v6  ;;  %v3924_v28 = vadd.f32 %v4771_v11, %v6590_v39 }
 0x2ec   : > { %v3915_v48 = vpop.f32.mrf.mxu1 }
 0x2ed   : > { %3958 = vst [vmem:[%s6593_s25 + $0xf8] sm:$0xff] %v3924_v28  ;;  %v3916_v27 = vadd.f32 %v6590_v39, %v3915_v48 }
 0x2ef   : > { %3956 = vst [vmem:[%s6593_s25 + $0xe8] sm:$0xff] %v3916_v27 }
 0x2f0   : > { %4845 = shalt.err (!%p4842_p3)
}
 0x2f1   : > { %s4846_s12 = scalar_lea.hbm %s6660_s7, 4096  ;;  %s4850_s15 = scalar_lea.hbm %s6714_s5, 8192 }
 0x2f2   : > { %p4847_p4 = scmp.ne.s32.totalorder %s6660_s7, %s4846_s12  ;;  %p4851_p9 = scmp.lt.s32.totalorder %s6660_s7, %s6714_s5 }
 0x2f3   : > { %p4852_p10 = scmp.lt.s32.totalorder %s4850_s15, %s4846_s12 }
 0x2f4   : > { %p4848_p7 = pnand %p4847_p4, %p4966_p5 }
 0x2f5   : > { %p4853_p11 = por %p4852_p10, %p4851_p9 }
 0x2f6   : > { %p4849_p8 = pneg %p4848_p7 }
 0x2f8   : > { %p4854_p12 = pnand %p4853_p11, %p4849_p8 }
 0x2fa   : > { %4857 = shalt.err (!%p4854_p12)
}
 0x2fb   : > { %s4896_s25 = smov 128   ;;  %s4897_s26 = smov 8  }
 0x2fc   : > { %4782 = dma.vmem_to_hbm [thread:$0]  (%p4966_p5), %s6662_s30, 4096, %s6660_s7, %s6669_s22, %s4896_s25, %s4896_s25, %s4897_s26  }
 0x2fd PF: > { %p4788_p13 = scmp.ge.s32.totalorder %s4892_s21, 2  ;;  %s3988_s6 = sand.u32 1, %s4880_s18  }
 0x2fe   : > { %s3989_s17 = scalar_lea.sflag [#allocation3], %s3988_s6 }
 0x2ff   : > { %p4785_p0 = pnand %p4788_p13, %p4970_p6 }
 0x301   : > { %p4786_p1 = pneg %p4785_p0 }
 0x303   : > { %4875 = dma.done.wait (%p4786_p1), %s3989_s17, 4096  }
 0x304   : > { %4877 = vsyncadd (%p4786_p1), %s3989_s17, 4294963200  ;;  %p15_p2 = scmp.ge.s32.totalorder %s4953_s24, 4   ;;  %s6939_s18 = smov %s4884_s19 }
 0x305   : > { %s6940_s19 = smov %s4888_s20  ;;  %s6941_s20 = smov %s4964_s27 }
 0x306   : > { %s6942_s21 = smov %s4953_s24  ;;  %17 = sbr.rel (!%p15_p2) target bundleno = 3 (0x3), region = 83 }
 0x30b   :  { %3994 = vsyncpa [#allocation3], 1 }
 0x30c   :  { %3996 = vsyncpa [#allocation3 + $0x1], 1 }

</bundles_post_ra>
